<compile_context>
chip_gen: v7x
topology: tpu7x:2x2x1
jax: 0.10.0
libtpu: 0.0.40
codegen_flags: <defaults>
</compile_context>

<pallas_src>
import jax
import jax.numpy as jnp
from jax.experimental import pallas as pl
from jax.experimental.pallas import tpu as pltpu


def _round_up(x, m):
    return (x + m - 1) // m * m


def _chip_caps():
    """(cap_tm, cap_tk, two_tensorcores) based on the local TPU generation."""
    try:
        kind = jax.devices()[0].device_kind.lower()
    except Exception:
        kind = ""
    if "v7" in kind:
        # 64 MiB VMEM per TensorCore, 2 TensorCores per chip.
        return 512, 2048, True
    if "v6" in kind:
        return 512, 2048, False
    if "v5 lite" in kind or "v5e" in kind or "v5lite" in kind:
        # 16 MiB default scoped VMEM, 4x128^2 MXU -> smaller tiles suffice.
        return 256, 1024, False
    # v4 / v5p / unknown: conservative.
    return 256, 1024, False


def _pick_k_tiling(k_dim, cap_tk):
    """Pad K only as far as needed (small granularity) while keeping large,
    evenly dividing K tiles.  Returns (k_pad, tk)."""
    best = None
    for g in (128, 256, 384, 512):
        kp = _round_up(k_dim, g)
        q = kp // 128
        max_d = max(1, min(q, cap_tk // 128))
        d = max(dd for dd in range(1, max_d + 1) if q % dd == 0)
        tk = 128 * d
        key = (kp // tk, kp)          # fewest K steps, then least padding
        if best is None or key < best[0]:
            best = (key, kp, tk)
    return best[1], best[2]


def _pick_m_tile(batch, cap_tm, two_cores):
    """M tile: multiple of 16, minimal batch padding, as large as possible;
    on a 2-TensorCore chip make sure the parallel M axis has >=2 steps."""
    best_tm = 16
    best_pad = _round_up(batch, 16) - batch
    for c in range(16, cap_tm + 1, 16):
        pad = _round_up(batch, c) - batch
        if pad < best_pad or (pad == best_pad and c > best_tm):
            best_tm, best_pad = c, pad
    tm = best_tm
    if two_cores and _round_up(batch, tm) // tm < 2 and tm > 16:
        # Halve the M tile so both v7x TensorCores get a tile to work on.
        tm = min(tm, max(16, _round_up((batch + 1) // 2, 16)))
    return tm


def fused_probe_kernel(x_ref, wb_ref, bb_ref, wf_ref, bf_ref, o_ref, feat_acc):
    """One K-step of: feat = x @ Wb + bb ; out = feat @ Wf + bf.

    x_ref:  [tm, tk]  f32 input tile (cast to bf16 in-kernel for the MXU)
    wb_ref: [tk, F]   bf16 backbone weight tile (K-streamed)
    bb_ref: [1,  F]   f32 backbone bias
    wf_ref: [F,  Np]  f32 fc weight (fully resident, Np = padded classes)
    bf_ref: [1,  Np]  f32 fc bias
    o_ref:  [tm, Np]  f32 logits tile
    feat_acc: [tm, F] f32 VMEM accumulator for the fused intermediate.
    """
    k = pl.program_id(1)

    part = jnp.dot(x_ref[...].astype(jnp.bfloat16), wb_ref[...],
                   preferred_element_type=jnp.float32)

    # First K step writes the accumulator directly (no zero-init pass and no
    # redundant read-modify-write of the scratch).
    @pl.when(k == 0)
    def _first():
        feat_acc[...] = part

    @pl.when(k != 0)
    def _accumulate():
        feat_acc[...] += part

    @pl.when(k == pl.num_programs(1) - 1)
    def _finalize():
        # Backbone bias added exactly once, in f32.
        feat = feat_acc[...] + bb_ref[...]
        # Probe fc layer kept fully in f32 (matches torch nn.Linear fidelity);
        # this matmul is tiny so the f32 MXU rate does not matter.  Output is
        # lane-dense (Np is a multiple of 128) -> unmasked stores.
        logits = jnp.dot(feat, wf_ref[...],
                         preferred_element_type=jnp.float32) + bf_ref[...]
        o_ref[...] = logits.astype(o_ref.dtype)


def fused_linear_probe(x_flat, wb, bb, wf, bf, *, tm, tk):
    """out = (x_flat @ wb + bb) @ wf + bf, fused in one pallas_call.

    Shapes (already padded by the caller):
      x_flat [Mp, Kp] f32, wb [Kp, F] bf16, bb [1, F] f32,
      wf [F, Np] f32, bf [1, Np] f32  ->  [Mp, Np] f32
    """
    Mp, Kp = x_flat.shape
    Kw, F = wb.shape
    Fw, Np = wf.shape
    assert Kp == Kw and F == Fw
    assert bb.shape == (1, F) and bf.shape == (1, Np)
    assert Mp % tm == 0 and Kp % tk == 0
    assert Np % 128 == 0 and F % 128 == 0 and tk % 128 == 0

    grid_m, grid_k = Mp // tm, Kp // tk

    # VMEM budget: double-buffered streaming operands + resident scratch.
    # Used to raise the scoped-VMEM limit when large tiles exceed defaults
    # (v5e default is 16 MiB; v7x physical is only 64 MiB, so stay well under).
    est = (2 * tm * tk * 4          # x tiles (f32)
           + 2 * tk * F * 2         # wb tiles (bf16)
           + 2 * F * Np * 4         # wf (f32, constant index)
           + 2 * tm * Np * 4        # output tiles
           + tm * F * 4             # feature accumulator
           + 2 * (F + Np) * 4)      # biases
    vmem_limit = int(min(56 * 1024 * 1024,
                         max(32 * 1024 * 1024, est * 5 // 4)))
    # NOTE: wf/bb/bf have constant index_maps; pipeline_mode=pl.Buffered(1)
    # would shave ~0.5 MiB of VMEM but their footprint is already negligible
    # against the tile budget, so the default buffering is kept.

    cost = pl.CostEstimate(
        flops=2 * Mp * Kp * F + 2 * Mp * F * Np,
        transcendentals=0,
        bytes_accessed=(Mp * Kp * 4             # x read once
                        + grid_m * Kp * F * 2   # wb re-streamed per M tile
                        + F * Np * 4            # fc weight
                        + Mp * Np * 4))         # logits written

    return pl.pallas_call(
        fused_probe_kernel,
        out_shape=jax.ShapeDtypeStruct((Mp, Np), jnp.float32),
        grid=(grid_m, grid_k),
        in_specs=[
            pl.BlockSpec((tm, tk), lambda i, k: (i, k)),   # x tile
            pl.BlockSpec((tk, F), lambda i, k: (k, 0)),    # backbone W tile
            pl.BlockSpec((1, F), lambda i, k: (0, 0)),     # backbone bias
            pl.BlockSpec((F, Np), lambda i, k: (0, 0)),    # fc W (resident)
            pl.BlockSpec((1, Np), lambda i, k: (0, 0)),    # fc bias
        ],
        out_specs=pl.BlockSpec((tm, Np), lambda i, k: (i, 0)),
        scratch_shapes=[pltpu.VMEM((tm, F), jnp.float32)],
        compiler_params=pltpu.CompilerParams(
            dimension_semantics=("parallel", "arbitrary"),
            vmem_limit_bytes=vmem_limit),
        cost_estimate=cost,
    )(x_flat, wb, bb, wf, bf)


class LinearProbePallas:
    """JAX/Pallas equivalent of the PyTorch LinearProbe module (forward)."""

    def __init__(self, key, in_flat_dim, feature_dim=768, num_classes=200):
        k0, k1, k2 = jax.random.split(key, 3)
        self.feature_dim = feature_dim
        self.num_classes = num_classes
        self.in_flat_dim = in_flat_dim

        self.cap_tm, cap_tk, self.two_cores = _chip_caps()
        self.k_pad, self.tk = _pick_k_tiling(in_flat_dim, cap_tk)
        self.n_pad = _round_up(num_classes, 128)   # lane-dense logits

        # Synthetic frozen backbone: linear projection C*H*W -> feature_dim.
        # TODO(synk): the real backbone is an external module passed to
        # __init__; a deterministic frozen linear stand-in is used here.
        wb = jax.random.normal(k0, (in_flat_dim, feature_dim),
                               jnp.float32) * 0.02
        wb = jnp.pad(wb, ((0, self.k_pad - in_flat_dim), (0, 0)))
        self.backbone_w = wb.astype(jnp.bfloat16)          # [Kp, F] bf16
        self.backbone_b = jnp.zeros((1, feature_dim), jnp.float32)
        # TODO(synk): on v7x the frozen backbone weight could be stored as
        # fp8(e4m3) + per-channel scale to halve the dominant HBM stream;
        # kept bf16 here for cross-generation (v5e/v6e) safety.

        # Probe fc layer (nn.Linear(feature_dim, num_classes)); weights stored
        # transposed ([in, out]), padded along out to n_pad, and kept in f32
        # so the probe layer matches torch f32 nn.Linear fidelity.
        bound = 1.0 / float(feature_dim) ** 0.5
        wf = jax.random.uniform(k1, (feature_dim, num_classes),
                                jnp.float32, -bound, bound)
        bf = jax.random.uniform(k2, (1, num_classes),
                                jnp.float32, -bound, bound)
        self.fc_w = jnp.pad(wf, ((0, 0), (0, self.n_pad - num_classes)))
        self.fc_b = jnp.pad(bf, ((0, 0), (0, self.n_pad - num_classes)))

    def __call__(self, x_nchw):
        B = x_nchw.shape[0]
        # Keep x in f32: no wrapper-side dtype round trip through HBM; the
        # bf16 cast for the MXU happens in-kernel on the already-DMA'd tile.
        x_flat = x_nchw.reshape(B, -1).astype(jnp.float32)

        tm = _pick_m_tile(B, self.cap_tm, self.two_cores)
        m_pad = _round_up(B, tm)

        pad_m = m_pad - B
        pad_k = self.k_pad - x_flat.shape[1]
        if pad_m or pad_k:
            x_flat = jnp.pad(x_flat, ((0, pad_m), (0, pad_k)))

        # torch.no_grad() on the backbone only affects backward; forward math
        # is identical.  TODO(synk): use lax.stop_gradient on backbone params
        # if this is ever trained.
        logits = fused_linear_probe(
            x_flat, self.backbone_w, self.backbone_b,
            self.fc_w, self.fc_b, tm=tm, tk=self.tk)

        return logits[:B, :self.num_classes]


if __name__ == "__main__":
    key = jax.random.PRNGKey(0)
    kx, kp = jax.random.split(key)

    # Small deterministic NCHW input consistent with an image backbone.
    B, C, H, W = 2, 4, 16, 16
    x = jax.random.normal(kx, (B, C, H, W), jnp.float32)

    probe = LinearProbePallas(kp, in_flat_dim=C * H * W,
                              feature_dim=768, num_classes=200)

    logits = probe(x)
    jax.block_until_ready(logits)

    # Plain-JAX reference with the SAME weights / dtypes as the kernel:
    # bf16 backbone matmul with f32 accumulation, f32 probe fc layer.
    x_flat = x.reshape(B, -1)
    x_flat = jnp.pad(x_flat, ((0, 0), (0, probe.k_pad - C * H * W)))
    feat_ref = jnp.dot(x_flat.astype(jnp.bfloat16), probe.backbone_w,
                       preferred_element_type=jnp.float32) + probe.backbone_b
    ref = jnp.dot(feat_ref, probe.fc_w,
                  preferred_element_type=jnp.float32) + probe.fc_b
    ref = ref[:, :probe.num_classes]

    assert logits.shape == (B, 200)
    assert jnp.allclose(logits, ref, atol=5e-3, rtol=5e-3)

    print("KERNEL_OK")
</pallas_src>

<mosaic_0001>
module attributes {stable_mosaic.version = 11 : i64} {
  func.func @fused_probe_kernel(%arg0: i32, %arg1: i32, %arg2: memref<16x1024xf32, #tpu.memory_space<vmem>>, %arg3: memref<1024x768xbf16, #tpu.memory_space<vmem>>, %arg4: memref<1x768xf32, #tpu.memory_space<vmem>>, %arg5: memref<768x256xf32, #tpu.memory_space<vmem>>, %arg6: memref<1x256xf32, #tpu.memory_space<vmem>>, %arg7: memref<16x256xf32, #tpu.memory_space<vmem>>, %arg8: memref<16x768xf32, #tpu.memory_space<vmem>>) attributes {dimension_semantics = [#tpu.dimension_semantics<parallel>, #tpu.dimension_semantics<arbitrary>], iteration_bounds = array<i64: 1, 1>, scalar_prefetch = 0 : i64, scratch_operands = 1 : i64, tpu.core_type = #tpu.core_type<tc>, window_params = [{transform_indices = @transform_0, window_bounds = array<i64: 16, 1024>}, {transform_indices = @transform_1, window_bounds = array<i64: 1024, 768>}, {pipeline_mode = #tpu.pipeline_mode<synchronous>, transform_indices = @transform_2, window_bounds = array<i64: 1, 768>}, {pipeline_mode = #tpu.pipeline_mode<synchronous>, transform_indices = @transform_3, window_bounds = array<i64: 768, 256>}, {pipeline_mode = #tpu.pipeline_mode<synchronous>, transform_indices = @transform_4, window_bounds = array<i64: 1, 256>}, {transform_indices = @transform_5, window_bounds = array<i64: 16, 256>}]} {
    %c0 = arith.constant 0 : index
    %c0_0 = arith.constant 0 : index
    %0 = vector.load %arg2[%c0, %c0_0] : memref<16x1024xf32, #tpu.memory_space<vmem>>, vector<16x1024xf32>
    %1 = arith.truncf %0 : vector<16x1024xf32> to vector<16x1024xbf16>
    %c0_1 = arith.constant 0 : index
    %c0_2 = arith.constant 0 : index
    %2 = vector.load %arg3[%c0_1, %c0_2] : memref<1024x768xbf16, #tpu.memory_space<vmem>>, vector<1024x768xbf16>
    %cst = arith.constant dense<0.000000e+00> : vector<16x768xf32>
    %3 = tpu.matmul %1, %2, %cst {dimension_numbers = #tpu.dot_dimension_numbers<[1], [0], [0], [1], [0, 0, 1, 1], [], []>} : vector<16x1024xbf16>, vector<1024x768xbf16>, vector<16x768xf32> -> vector<16x768xf32>
    %c0_i32 = arith.constant 0 : i32
    %4 = arith.cmpi eq, %arg1, %c0_i32 : i32
    %5 = arith.extui %4 : i1 to i32
    %c0_i32_3 = arith.constant 0 : i32
    %6 = arith.cmpi ne, %5, %c0_i32_3 : i32
    scf.if %6 {
      %c0_8 = arith.constant 0 : index
      %c0_9 = arith.constant 0 : index
      %13 = vector.load %arg8[%c0_8, %c0_9] : memref<16x768xf32, #tpu.memory_space<vmem>>, vector<16x768xf32>
      tpu.vector_store %arg8[%c0_8, %c0_9], %3 {strides = array<i32>} : memref<16x768xf32, #tpu.memory_space<vmem>>, vector<16x768xf32>,
    } else {
    }
    %c0_i32_4 = arith.constant 0 : i32
    %7 = arith.cmpi ne, %arg1, %c0_i32_4 : i32
    %8 = arith.extui %7 : i1 to i32
    %c0_i32_5 = arith.constant 0 : i32
    %9 = arith.cmpi ne, %8, %c0_i32_5 : i32
    scf.if %9 {
      %c0_8 = arith.constant 0 : index
      %c0_9 = arith.constant 0 : index
      %13 = vector.load %arg8[%c0_8, %c0_9] : memref<16x768xf32, #tpu.memory_space<vmem>>, vector<16x768xf32>
      %14 = arith.addf %13, %3 : vector<16x768xf32>
      %c0_10 = arith.constant 0 : index
      %c0_11 = arith.constant 0 : index
      %15 = vector.load %arg8[%c0_10, %c0_11] : memref<16x768xf32, #tpu.memory_space<vmem>>, vector<16x768xf32>
      tpu.vector_store %arg8[%c0_10, %c0_11], %14 {strides = array<i32>} : memref<16x768xf32, #tpu.memory_space<vmem>>, vector<16x768xf32>,
    } else {
    }
    %c0_i32_6 = arith.constant 0 : i32
    %10 = arith.cmpi eq, %arg1, %c0_i32_6 : i32
    %11 = arith.extui %10 : i1 to i32
    %c0_i32_7 = arith.constant 0 : i32
    %12 = arith.cmpi ne, %11, %c0_i32_7 : i32
    scf.if %12 {
      %c0_8 = arith.constant 0 : index
      %c0_9 = arith.constant 0 : index
      %13 = vector.load %arg8[%c0_8, %c0_9] : memref<16x768xf32, #tpu.memory_space<vmem>>, vector<16x768xf32>
      %c0_10 = arith.constant 0 : index
      %c0_11 = arith.constant 0 : index
      %14 = vector.load %arg4[%c0_10, %c0_11] : memref<1x768xf32, #tpu.memory_space<vmem>>, vector<1x768xf32>
      %15 = vector.broadcast %14 : vector<1x768xf32> to vector<16x768xf32>
      %16 = arith.addf %13, %15 : vector<16x768xf32>
      %c0_12 = arith.constant 0 : index
      %c0_13 = arith.constant 0 : index
      %17 = vector.load %arg5[%c0_12, %c0_13] : memref<768x256xf32, #tpu.memory_space<vmem>>, vector<768x256xf32>
      %cst_14 = arith.constant dense<0.000000e+00> : vector<16x256xf32>
      %18 = tpu.matmul %16, %17, %cst_14 {dimension_numbers = #tpu.dot_dimension_numbers<[1], [0], [0], [1], [0, 0, 1, 1], [], []>} : vector<16x768xf32>, vector<768x256xf32>, vector<16x256xf32> -> vector<16x256xf32>
      %c0_15 = arith.constant 0 : index
      %c0_16 = arith.constant 0 : index
      %19 = vector.load %arg6[%c0_15, %c0_16] : memref<1x256xf32, #tpu.memory_space<vmem>>, vector<1x256xf32>
      %20 = vector.broadcast %19 : vector<1x256xf32> to vector<16x256xf32>
      %21 = arith.addf %18, %20 : vector<16x256xf32>
      %c0_17 = arith.constant 0 : index
      %c0_18 = arith.constant 0 : index
      %22 = vector.load %arg7[%c0_17, %c0_18] : memref<16x256xf32, #tpu.memory_space<vmem>>, vector<16x256xf32>
      tpu.vector_store %arg7[%c0_17, %c0_18], %21 {strides = array<i32>} : memref<16x256xf32, #tpu.memory_space<vmem>>, vector<16x256xf32>,
    } else {
    }
    return
  }
  func.func @transform_0(%arg0: i32, %arg1: i32) -> (i32, i32) {
    %c0_i32 = arith.constant 0 : i32
    return %arg0, %arg1 : i32, i32
  }
  func.func @transform_1(%arg0: i32, %arg1: i32) -> (i32, i32) {
    %c0_i32 = arith.constant 0 : i32
    %c0_i32_0 = arith.constant 0 : i32
    return %arg1, %c0_i32 : i32, i32
  }
  func.func @transform_2(%arg0: i32, %arg1: i32) -> (i32, i32) {
    %c0_i32 = arith.constant 0 : i32
    %c0_i32_0 = arith.constant 0 : i32
    %c0_i32_1 = arith.constant 0 : i32
    return %c0_i32, %c0_i32_0 : i32, i32
  }
  func.func @transform_3(%arg0: i32, %arg1: i32) -> (i32, i32) {
    %c0_i32 = arith.constant 0 : i32
    %c0_i32_0 = arith.constant 0 : i32
    %c0_i32_1 = arith.constant 0 : i32
    return %c0_i32, %c0_i32_0 : i32, i32
  }
  func.func @transform_4(%arg0: i32, %arg1: i32) -> (i32, i32) {
    %c0_i32 = arith.constant 0 : i32
    %c0_i32_0 = arith.constant 0 : i32
    %c0_i32_1 = arith.constant 0 : i32
    return %c0_i32, %c0_i32_0 : i32, i32
  }
  func.func @transform_5(%arg0: i32, %arg1: i32) -> (i32, i32) {
    %c0_i32 = arith.constant 0 : i32
    %c0_i32_0 = arith.constant 0 : i32
    return %arg0, %c0_i32 : i32, i32
  }
}

</mosaic_0001>

<bundles_post_ra>
// kernel: tpu_custom_call.1
= control target key start
LH: loop header
LB: loop body
LE: loop exit
PB: predicated region body
PF: predicated region fallthrough
CT: control target
= control target key end

     0   :  { %10 = vsyncpa [#allocation4], 0  ;;  %s5051_s0 = inlined_call_operand.hbm [shape: f32[16,1024], index: 0, kind: input, shape index: {}]   ;;  %s5052_s1 = inlined_call_operand.hbm [shape: bf16[1024,768], index: 1, kind: input, shape index: {}]   ;;  %s5053_s2 = inlined_call_operand.hbm [shape: f32[1,768], index: 2, kind: input, shape index: {}]   ;;  %s5054_s3 = inlined_call_operand.hbm [shape: f32[768,256], index: 3, kind: input, shape index: {}]   ;;  %s5055_s4 = inlined_call_operand.hbm [shape: f32[1,256], index: 4, kind: input, shape index: {}]   ;;  %s5056_s5 = inlined_call_operand.hbm [shape: f32[16,256], index: 5, kind: output, shape index: {}]  }
   0x1   :  { %11 = vsyncpa [#allocation7], 0 }
   0x2   :  { %12 = vsyncpa [#allocation10], 0 }
   0x3   :  { %13 = vsyncpa [#allocation5], 0  ;;  %s4854_s18 = smov [#allocation6]   ;;  %s4714_s22 = scalar_lea.hbm %s5052_s1, 49152 }
   0x4   :  { %s31_s19 = sshll.u32 %s4854_s18, 4  ;;  %p4715_p0 = scmp.ne.s32.totalorder %s5052_s1, %s4714_s22  ;;  %s32_s19 = int_to_ptr.vmem [resolvable:$true] %s31_s19 }
   0x5   :  { %p4718_p1 = scmp.lt.u32.totalorder %s4714_s22, %s5052_s1 }
   0x7   :  { %p4720_p2 = pnand %p4718_p1, %p4715_p0 }
   0x9   :  { %4723 = shalt.err (!%p4720_p2)
}
   0xa   :  { %s4724_s27 = scalar_lea.vmem %s32_s19, 49152  ;;  %p4729_p4 = scmp.lt.s32.totalorder %s32_s19, %s32_s19 }
   0xb   :  { %p4725_p3 = scmp.ne.s32.totalorder %s32_s19, %s4724_s27  ;;  %p4730_p5 = scmp.lt.s32.totalorder %s4724_s27, %s4724_s27 }
   0xd   :  { %p4731_p6 = por %p4730_p5, %p4729_p4 }
   0xf   :  { %p4732_p7 = pnand %p4731_p6, %p4725_p3 }
  0x11   :  { %4735 = shalt.err (!%p4732_p7)
}
  0x12   :  { %s4855_s28 = smov 384   ;;  %s4856_s29 = smov 24  }
  0x13   :  { %37 = dma.hbm_to_vmem [thread:$0]  %s5052_s1, 49152, %s32_s19, [#allocation7], %s4855_s28, %s4855_s28, %s4856_s29  }
  0x14   :  { %s4857_s7 = smov [#allocation9]   ;;  %s4736_s11 = scalar_lea.hbm %s5054_s3, 24576 }
  0x15   :  { %s53_s8 = sshll.u32 %s4857_s7, 4  ;;  %p4737_p8 = scmp.ne.s32.totalorder %s5054_s3, %s4736_s11  ;;  %s54_s8 = int_to_ptr.vmem [resolvable:$true] %s53_s8 }
  0x16   :  { %p4740_p9 = scmp.lt.u32.totalorder %s4736_s11, %s5054_s3 }
  0x18   :  { %p4742_p10 = pnand %p4740_p9, %p4737_p8 }
  0x1a   :  { %4745 = shalt.err (!%p4742_p10)
}
  0x1b   :  { %s4746_s16 = scalar_lea.vmem %s54_s8, 24576  ;;  %p4751_p12 = scmp.lt.s32.totalorder %s54_s8, %s54_s8 }
  0x1c   :  { %p4747_p11 = scmp.ne.s32.totalorder %s54_s8, %s4746_s16  ;;  %p4752_p13 = scmp.lt.s32.totalorder %s4746_s16, %s4746_s16 }
  0x1e   :  { %p4753_p0 = por %p4752_p13, %p4751_p12 }
  0x20   :  { %p4754_p1 = pnand %p4753_p0, %p4747_p11 }
  0x22   :  { %4757 = shalt.err (!%p4754_p1)
}
  0x23   :  { %s4858_s1 = smov 256   ;;  %s4859_s17 = smov 16  }
  0x24   :  { %59 = dma.hbm_to_vmem [thread:$0]  %s5054_s3, 24576, %s54_s8, [#allocation10], %s4858_s1, %s4858_s1, %s4859_s17  }
  0x25   :  { %s4860_s20 = smov [#allocation3]   ;;  %s4758_s24 = scalar_lea.hbm %s5051_s0, 2048 }
  0x26   :  { %s19_s21 = sshll.u32 %s4860_s20, 4  ;;  %p4759_p2 = scmp.ne.s32.totalorder %s5051_s0, %s4758_s24  ;;  %s20_s21 = int_to_ptr.vmem [resolvable:$true] %s19_s21 }
  0x27   :  { %p4762_p3 = scmp.lt.u32.totalorder %s4758_s24, %s5051_s0 }
  0x29   :  { %p4764_p4 = pnand %p4762_p3, %p4759_p2 }
  0x2b   :  { %4767 = shalt.err (!%p4764_p4)
}
  0x2c   :  { %s4768_s29 = scalar_lea.vmem %s20_s21, 2048  ;;  %p4773_p6 = scmp.lt.s32.totalorder %s20_s21, %s20_s21 }
  0x2d   :  { %p4769_p5 = scmp.ne.s32.totalorder %s20_s21, %s4768_s29  ;;  %p4774_p7 = scmp.lt.s32.totalorder %s4768_s29, %s4768_s29 }
  0x2f   :  { %p4775_p8 = por %p4774_p7, %p4773_p6 }
  0x31   :  { %p4776_p9 = pnand %p4775_p8, %p4769_p5 }
  0x33   :  { %4779 = shalt.err (!%p4776_p9)
}
  0x34   :  { %s4861_s3 = smov 1024   ;;  %s4862_s30 = smov 64  }
  0x35   :  { %25 = dma.hbm_to_vmem [thread:$0]  %s5051_s0, 2048, %s20_s21, [#allocation4], %s4861_s3, %s4861_s3, %s4862_s30  }
  0x36   :  { %s4863_s8 = smov [#allocation8]   ;;  %s4864_s10 = smov [#allocation11]  }
  0x37   :  { %s44_s9 = sshll.u32 %s4863_s8, 4  ;;  %s66_s11 = sshll.u32 %s4864_s10, 4  ;;  %s45_s9 = int_to_ptr.vmem [resolvable:$true] %s44_s9  ;;  %s67_s11 = int_to_ptr.vmem [resolvable:$true] %s66_s11 }
  0x38   :  { %s4780_s14 = scalar_lea.hbm %s5053_s2, 96 }
  0x39   :  { %p4781_p10 = scmp.ne.s32.totalorder %s5053_s2, %s4780_s14  ;;  %p4784_p11 = scmp.lt.u32.totalorder %s4780_s14, %s5053_s2 }
  0x3b   :  { %p4786_p12 = pnand %p4784_p11, %p4781_p10 }
  0x3d   :  { %4789 = shalt.err (!%p4786_p12)
}
  0x3e   :  { %s4790_s0 = scalar_lea.vmem %s45_s9, 96  ;;  %p4795_p0 = scmp.lt.s32.totalorder %s45_s9, %s45_s9 }
  0x3f   :  { %p4791_p13 = scmp.ne.s32.totalorder %s45_s9, %s4790_s0  ;;  %p4796_p1 = scmp.lt.s32.totalorder %s4790_s0, %s4790_s0 }
  0x41   :  { %p4797_p2 = por %p4796_p1, %p4795_p0 }
  0x43   :  { %p4798_p3 = pnand %p4797_p2, %p4791_p13 }
  0x45   :  { %4801 = shalt.err (!%p4798_p3)
}
  0x46   :  { %47 = dma.hbm_to_vmem [thread:$0]  %s5053_s2, 96, %s45_s9, [#allocation7]  }
  0x47   :  { %s4802_s24 = scalar_lea.hbm %s5055_s4, 32 }
  0x48   :  { %p4803_p4 = scmp.ne.s32.totalorder %s5055_s4, %s4802_s24  ;;  %p4806_p5 = scmp.lt.u32.totalorder %s4802_s24, %s5055_s4 }
  0x4a   :  { %p4808_p6 = pnand %p4806_p5, %p4803_p4 }
  0x4c   :  { %4811 = shalt.err (!%p4808_p6)
}
  0x4d   :  { %s4812_s29 = scalar_lea.vmem %s67_s11, 32  ;;  %p4817_p8 = scmp.lt.s32.totalorder %s67_s11, %s67_s11 }
  0x4e   :  { %p4813_p7 = scmp.ne.s32.totalorder %s67_s11, %s4812_s29  ;;  %p4818_p9 = scmp.lt.s32.totalorder %s4812_s29, %s4812_s29 }
  0x50   :  { %p4819_p10 = por %p4818_p9, %p4817_p8 }
  0x52   :  { %p4820_p11 = pnand %p4819_p10, %p4813_p7 }
  0x54   :  { %4823 = shalt.err (!%p4820_p11)
}
  0x55   :  { %69 = dma.hbm_to_vmem [thread:$0]  %s5055_s4, 32, %s67_s11, [#allocation10]  }
  0x56   :  { %4846 = dma.done.wait [#allocation4], 2048  }
  0x57   :  { %4847 = vsyncadd [#allocation4], 4294965248 }
  0x58   :  { %4848 = dma.done.wait [#allocation7], 49248  }
  0x59   :  { %4849 = vsyncadd [#allocation7], 4294918048 }
  0x5a   :  { %4850 = dma.done.wait [#allocation10], 24608  }
  0x5b   :  { %4851 = vsyncadd [#allocation10], 4294942688  ;;  %v4138_v0 = vld [vmem:[#allocation6 + $0x4] ss:$24 sps:$4 sm:$0xff]   ;;  %v4142_v2 = vld [vmem:[#allocation6] ss:$24 sps:$4 sm:$0xff]  }
  0x5c   :  { %v4140_v1 = vld [vmem:[#allocation6 + $0xc] ss:$24 sps:$4 sm:$0xff]   ;;  %2413 = vmatprep.subr.bf16.mxu0 %v4138_v0  ;;  %v4143_v3 = vld [vmem:[#allocation6 + $0x8] ss:$24 sps:$4 sm:$0xff]   ;;  %v4146_v5 = vld [vmem:[#allocation6 + $0x3c] ss:$24 sps:$4 sm:$0xff]  }
  0x5d   :  { %2585 = vmatprep.subr.bf16.mxu1 %v4140_v1  ;;  %v4144_v4 = vld [vmem:[#allocation6 + $0x34] ss:$24 sps:$4 sm:$0xff]   ;;  %2414 = vmatpush1.bf16.msra.mxu0 %v4142_v2  ;;  %v4148_v6 = vld [vmem:[#allocation6 + $0x30] ss:$24 sps:$4 sm:$0xff]   ;;  %v4150_v8 = vld [vmem:[#allocation6 + $0x64] ss:$24 sps:$4 sm:$0xff]  }
  0x5e   :  { %2586 = vmatpush1.bf16.msra.mxu1 %v4143_v3  ;;  %2415 = vmatprep.subr.bf16.mxu0 %v4144_v4  ;;  %v4149_v7 = vld [vmem:[#allocation6 + $0x38] ss:$24 sps:$4 sm:$0xff]   ;;  %v4152_v9 = vld [vmem:[#allocation6 + $0x6c] ss:$24 sps:$4 sm:$0xff]   ;;  %v4155_v11 = vld [vmem:[#allocation6 + $0x68] ss:$24 sps:$4 sm:$0xff]  }
  0x5f   :  { %2587 = vmatprep.subr.bf16.mxu1 %v4146_v5  ;;  %v4154_v10 = vld [vmem:[#allocation6 + $0x60] ss:$24 sps:$4 sm:$0xff]   ;;  %v4156_v12 = vld [vmem:[#allocation6 + $0x94] ss:$24 sps:$4 sm:$0xff]   ;;  %v4160_v14 = vld [vmem:[#allocation6 + $0x90] ss:$24 sps:$4 sm:$0xff]  }
  0x60   :  { %v4158_v13 = vld [vmem:[#allocation6 + $0x9c] ss:$24 sps:$4 sm:$0xff]   ;;  %v4161_v15 = vld [vmem:[#allocation6 + $0x98] ss:$24 sps:$4 sm:$0xff]   ;;  %v4164_v17 = vld [vmem:[#allocation6 + $0xcc] ss:$24 sps:$4 sm:$0xff]  }
  0x61   :  { %2416 = vmatpush1.bf16.msra.mxu0 %v4148_v6  ;;  %v4162_v16 = vld [vmem:[#allocation6 + $0xc4] ss:$24 sps:$4 sm:$0xff]   ;;  %v4166_v18 = vld [vmem:[#allocation6 + $0xc0] ss:$24 sps:$4 sm:$0xff]   ;;  %v4168_v20 = vld [vmem:[#allocation6 + $0xf4] ss:$24 sps:$4 sm:$0xff]  }
  0x62   :  { %2588 = vmatpush1.bf16.msra.mxu1 %v4149_v7  ;;  %2417 = vmatprep.subr.bf16.mxu0 %v4150_v8  ;;  %v4167_v19 = vld [vmem:[#allocation6 + $0xc8] ss:$24 sps:$4 sm:$0xff]   ;;  %v4170_v21 = vld [vmem:[#allocation6 + $0xfc] ss:$24 sps:$4 sm:$0xff]   ;;  %v4173_v23 = vld [vmem:[#allocation6 + $0xf8] ss:$24 sps:$4 sm:$0xff]  }
  0x63   :  { %2589 = vmatprep.subr.bf16.mxu1 %v4152_v9  ;;  %v4172_v22 = vld [vmem:[#allocation6 + $0xf0] ss:$24 sps:$4 sm:$0xff]   ;;  %v4174_v24 = vld [vmem:[#allocation6 + $0x124] ss:$24 sps:$4 sm:$0xff]   ;;  %v4178_v26 = vld [vmem:[#allocation6 + $0x120] ss:$24 sps:$4 sm:$0xff]  }
  0x64   :  { %v4176_v25 = vld [vmem:[#allocation6 + $0x12c] ss:$24 sps:$4 sm:$0xff]   ;;  %v4179_v27 = vld [vmem:[#allocation6 + $0x128] ss:$24 sps:$4 sm:$0xff]   ;;  %v4182_v29 = vld [vmem:[#allocation6 + $0x15c] ss:$24 sps:$4 sm:$0xff]  }
  0x65   :  { %2418 = vmatpush1.bf16.msra.mxu0 %v4154_v10  ;;  %v4180_v28 = vld [vmem:[#allocation6 + $0x154] ss:$24 sps:$4 sm:$0xff]   ;;  %v4184_v30 = vld [vmem:[#allocation6 + $0x150] ss:$24 sps:$4 sm:$0xff]   ;;  %v4186_v32 = vld [vmem:[#allocation6 + $0x184] ss:$24 sps:$4 sm:$0xff]  }
  0x66   :  { %2590 = vmatpush1.bf16.msra.mxu1 %v4155_v11  ;;  %2419 = vmatprep.subr.bf16.mxu0 %v4156_v12  ;;  %v4185_v31 = vld [vmem:[#allocation6 + $0x158] ss:$24 sps:$4 sm:$0xff]   ;;  %v4188_v33 = vld [vmem:[#allocation6 + $0x18c] ss:$24 sps:$4 sm:$0xff]   ;;  %v4191_v35 = vld [vmem:[#allocation6 + $0x188] ss:$24 sps:$4 sm:$0xff]  }
  0x67   :  { %2591 = vmatprep.subr.bf16.mxu1 %v4158_v13  ;;  %v4190_v34 = vld [vmem:[#allocation6 + $0x180] ss:$24 sps:$4 sm:$0xff]   ;;  %v4192_v36 = vld [vmem:[#allocation6 + $0x1b4] ss:$24 sps:$4 sm:$0xff]   ;;  %v4196_v38 = vld [vmem:[#allocation6 + $0x1b0] ss:$24 sps:$4 sm:$0xff]  }
  0x68   :  { %v4194_v37 = vld [vmem:[#allocation6 + $0x1bc] ss:$24 sps:$4 sm:$0xff]   ;;  %v4197_v39 = vld [vmem:[#allocation6 + $0x1b8] ss:$24 sps:$4 sm:$0xff]   ;;  %v4200_v41 = vld [vmem:[#allocation6 + $0x1ec] ss:$24 sps:$4 sm:$0xff]  }
  0x69   :  { %2420 = vmatpush1.bf16.msra.mxu0 %v4160_v14  ;;  %v4198_v40 = vld [vmem:[#allocation6 + $0x1e4] ss:$24 sps:$4 sm:$0xff]   ;;  %v4202_v42 = vld [vmem:[#allocation6 + $0x1e0] ss:$24 sps:$4 sm:$0xff]   ;;  %v4204_v44 = vld [vmem:[#allocation6 + $0x214] ss:$24 sps:$4 sm:$0xff]  }
  0x6a   :  { %2592 = vmatpush1.bf16.msra.mxu1 %v4161_v15  ;;  %2421 = vmatprep.subr.bf16.mxu0 %v4162_v16  ;;  %v4203_v43 = vld [vmem:[#allocation6 + $0x1e8] ss:$24 sps:$4 sm:$0xff]   ;;  %v4206_v45 = vld [vmem:[#allocation6 + $0x21c] ss:$24 sps:$4 sm:$0xff]   ;;  %v4209_v49 = vld [vmem:[#allocation6 + $0x218] ss:$24 sps:$4 sm:$0xff]  }
  0x6b   :  { %2593 = vmatprep.subr.bf16.mxu1 %v4164_v17  ;;  %v86_v46 = vld [vmem:[#allocation3 + $0x8] sm:$0xff]  ;;  %v4210_v51 = vld [vmem:[#allocation6 + $0x244] ss:$24 sps:$4 sm:$0xff]   ;;  %v4214_v53 = vld [vmem:[#allocation6 + $0x240] ss:$24 sps:$4 sm:$0xff]   ;;  %s4865_s4 = smov [#allocation12]  }
  0x6c   :  { %v94_v47 = vld [vmem:[#allocation3 + $0x48] sm:$0xff]  ;;  %v4218_v56 = vld [vmem:[#allocation6 + $0x27c] ss:$24 sps:$4 sm:$0xff]   ;;  %v4221_v58 = vld [vmem:[#allocation6 + $0x278] ss:$24 sps:$4 sm:$0xff]   ;;  %s3488_s30 = sshll.u32 %s4865_s4, 4  ;;  %s3489_s30 = int_to_ptr.vmem [resolvable:$true] %s3488_s30 }
  0x6d   :  { %2422 = vmatpush1.bf16.msra.mxu0 %v4166_v18  ;;  %v4208_v48 = vld [vmem:[#allocation6 + $0x210] ss:$24 sps:$4 sm:$0xff]   ;;  %v4959_v50 = vpack.c.bf16 %v94_v47, %v86_v46  ;;  %v4212_v52 = vld [vmem:[#allocation6 + $0x24c] ss:$24 sps:$4 sm:$0xff]   ;;  %v4226_v61 = vld [vmem:[#allocation6 + $0x2a0] ss:$24 sps:$4 sm:$0xff]   ;;  %p4829_p13 = scmp.lt.s32.totalorder %s3489_s30, %s3489_s30 }
  0x6e   :  { %2594 = vmatpush1.bf16.msra.mxu1 %v4167_v19  ;;  %2423 = vmatprep.subr.bf16.mxu0 %v4168_v20  ;;  %v4215_v54 = vld [vmem:[#allocation6 + $0x248] ss:$24 sps:$4 sm:$0xff]   ;;  %v4216_v55 = vld [vmem:[#allocation6 + $0x274] ss:$24 sps:$4 sm:$0xff]   ;;  %v4222_v59 = vld [vmem:[#allocation6 + $0x2a4] ss:$24 sps:$4 sm:$0xff]  }
  0x6f   :  { %2595 = vmatprep.subr.bf16.mxu1 %v4170_v21  ;;  %2445 = vmatprep.mubr.bf16.mxu0 %v4959_v50  ;;  %v4220_v57 = vld [vmem:[#allocation6 + $0x270] ss:$24 sps:$4 sm:$0xff]   ;;  %v4224_v60 = vld [vmem:[#allocation6 + $0x2ac] ss:$24 sps:$4 sm:$0xff]   ;;  %v4230_v0 = vld [vmem:[#allocation6 + $0x2dc] ss:$24 sps:$4 sm:$0xff]  }
  0x70   :  { %2617 = vmatprep.mubr.bf16.mxu1 %v4959_v50  ;;  %v4227_v62 = vld [vmem:[#allocation6 + $0x2a8] ss:$24 sps:$4 sm:$0xff]   ;;  %v4228_v63 = vld [vmem:[#allocation6 + $0x2d4] ss:$24 sps:$4 sm:$0xff]   ;;  %v4233_v2 = vld [vmem:[#allocation6 + $0x2d8] ss:$24 sps:$4 sm:$0xff]  }
  0x71   :  { %2424 = vmatpush1.bf16.msra.mxu0 %v4172_v22  ;;  %v4232_v1 = vld [vmem:[#allocation6 + $0x2d0] ss:$24 sps:$4 sm:$0xff]   ;;  %v4236_v3 = vld [vmem:[#allocation6 + $0x304] ss:$24 sps:$4 sm:$0xff]   ;;  %v4234_v7 = vld [vmem:[#allocation6 + $0x300] ss:$24 sps:$4 sm:$0xff]  }
  0x72   :  { %2596 = vmatpush1.bf16.msra.mxu1 %v4173_v23  ;;  %2425 = vmatprep.subr.bf16.mxu0 %v4174_v24  ;;  %v85_v4 = vld [vmem:[#allocation3] sm:$0xff]  ;;  %v4242_v10 = vld [vmem:[#allocation6 + $0x334] ss:$24 sps:$4 sm:$0xff]   ;;  %v4240_v12 = vld [vmem:[#allocation6 + $0x330] ss:$24 sps:$4 sm:$0xff]   ;;  %s4824_s6 = scalar_lea.vmem %s3489_s30, 512 }
  0x73   :  { %2597 = vmatprep.subr.bf16.mxu1 %v4176_v25  ;;  %v93_v5 = vld [vmem:[#allocation3 + $0x40] sm:$0xff]  ;;  %v4245_v11 = vld [vmem:[#allocation6 + $0x33c] ss:$24 sps:$4 sm:$0xff]   ;;  %v4243_v13 = vld [vmem:[#allocation6 + $0x338] ss:$24 sps:$4 sm:$0xff]   ;;  %p4825_p12 = scmp.ne.s32.totalorder %s3489_s30, %s4824_s6  ;;  %p4830_p0 = scmp.lt.s32.totalorder %s4824_s6, %s4824_s6 }
  0x74   :  { %v4239_v6 = vld [vmem:[#allocation6 + $0x30c] ss:$24 sps:$4 sm:$0xff]   ;;  %v4237_v8 = vld [vmem:[#allocation6 + $0x308] ss:$24 sps:$4 sm:$0xff]   ;;  %v4963_v9 = vpack.c.bf16 %v93_v5, %v85_v4  ;;  %v4257_v19 = vld [vmem:[#allocation6 + $0x39c] ss:$24 sps:$4 sm:$0xff]  }
  0x75   :  { %2426 = vmatpush1.bf16.msra.mxu0 %v4178_v26  ;;  %v4248_v14 = vld [vmem:[#allocation6 + $0x364] ss:$24 sps:$4 sm:$0xff]   ;;  %v4246_v16 = vld [vmem:[#allocation6 + $0x360] ss:$24 sps:$4 sm:$0xff]   ;;  %v4254_v18 = vld [vmem:[#allocation6 + $0x394] ss:$24 sps:$4 sm:$0xff]   ;;  %p4831_p1 = por %p4830_p0, %p4829_p13 }
  0x76   :  { %2598 = vmatpush1.bf16.msra.mxu1 %v4179_v27  ;;  %2427 = vmatprep.subr.bf16.mxu0 %v4180_v28  ;;  %v4251_v15 = vld [vmem:[#allocation6 + $0x36c] ss:$24 sps:$4 sm:$0xff]   ;;  %v4249_v17 = vld [vmem:[#allocation6 + $0x368] ss:$24 sps:$4 sm:$0xff]   ;;  %v4255_v21 = vld [vmem:[#allocation6 + $0x398] ss:$24 sps:$4 sm:$0xff]  }
  0x77   :  { %2599 = vmatprep.subr.bf16.mxu1 %v4182_v29  ;;  %v4252_v20 = vld [vmem:[#allocation6 + $0x390] ss:$24 sps:$4 sm:$0xff]   ;;  %v4260_v22 = vld [vmem:[#allocation6 + $0x3c4] ss:$24 sps:$4 sm:$0xff]   ;;  %v4258_v24 = vld [vmem:[#allocation6 + $0x3c0] ss:$24 sps:$4 sm:$0xff]   ;;  %p4832_p2 = pnand %p4831_p1, %p4825_p12 }
  0x78   :  { %v4263_v23 = vld [vmem:[#allocation6 + $0x3cc] ss:$24 sps:$4 sm:$0xff]   ;;  %v4261_v25 = vld [vmem:[#allocation6 + $0x3c8] ss:$24 sps:$4 sm:$0xff]   ;;  %v4269_v27 = vld [vmem:[#allocation6 + $0x3fc] ss:$24 sps:$4 sm:$0xff]  }
  0x79   :  { %2428 = vmatpush1.bf16.msra.mxu0 %v4184_v30  ;;  %v4266_v26 = vld [vmem:[#allocation6 + $0x3f4] ss:$24 sps:$4 sm:$0xff]   ;;  %v4264_v28 = vld [vmem:[#allocation6 + $0x3f0] ss:$24 sps:$4 sm:$0xff]   ;;  %v4272_v30 = vld [vmem:[#allocation6 + $0x424] ss:$24 sps:$4 sm:$0xff]  }
  0x7a   :  { %2600 = vmatpush1.bf16.msra.mxu1 %v4185_v31  ;;  %2429 = vmatprep.subr.bf16.mxu0 %v4186_v32  ;;  %v4267_v29 = vld [vmem:[#allocation6 + $0x3f8] ss:$24 sps:$4 sm:$0xff]   ;;  %v4275_v31 = vld [vmem:[#allocation6 + $0x42c] ss:$24 sps:$4 sm:$0xff]   ;;  %v4293_v46 = vld [vmem:[#allocation6 + $0x4bc] ss:$24 sps:$4 sm:$0xff]  }
  0x7b   :  { %2601 = vmatprep.subr.bf16.mxu1 %v4188_v33  ;;  %v88_v32 = vld [vmem:[#allocation3 + $0x18] sm:$0xff]  ;;  %v4288_v47 = vld [vmem:[#allocation6 + $0x4b0] ss:$24 sps:$4 sm:$0xff]  }
  0x7c   :  { %v96_v33 = vld [vmem:[#allocation3 + $0x58] sm:$0xff]  ;;  %v4321_v5 = vld [vmem:[#allocation6 + $0x5a8] ss:$24 sps:$4 sm:$0xff]  }
  0x7d   :  { %2430 = vmatpush1.bf16.msra.mxu0 %v4190_v34  ;;  %v4270_v34 = vld [vmem:[#allocation6 + $0x420] ss:$24 sps:$4 sm:$0xff]  }
  0x7e   :  { %2602 = vmatpush1.bf16.msra.mxu1 %v4191_v35  ;;  %2431 = vmatprep.subr.bf16.mxu0 %v4192_v36  ;;  %v4273_v35 = vld [vmem:[#allocation6 + $0x428] ss:$24 sps:$4 sm:$0xff]   ;;  %v4967_v36 = vpack.c.bf16 %v96_v33, %v88_v32  ;;  %v4351_v32 = vld [vmem:[#allocation6 + $0x698] ss:$24 sps:$4 sm:$0xff]   ;;  %v4356_v33 = vld [vmem:[#allocation6 + $0x6c4] ss:$24 sps:$4 sm:$0xff]  }
  0x7f   :  { %2603 = vmatprep.subr.bf16.mxu1 %v4194_v37  ;;  %v4278_v37 = vld [vmem:[#allocation6 + $0x454] ss:$24 sps:$4 sm:$0xff]   ;;  %v4318_v4 = vld [vmem:[#allocation6 + $0x5a0] ss:$24 sps:$4 sm:$0xff]  }
  0x81   :  { %2432 = vmatpush1.bf16.msra.mxu0 %v4196_v38  ;;  %v4281_v38 = vld [vmem:[#allocation6 + $0x45c] ss:$24 sps:$4 sm:$0xff]  }
  0x82   :  { %2604 = vmatpush1.bf16.msra.mxu1 %v4197_v39  ;;  %2433 = vmatprep.subr.bf16.mxu0 %v4198_v40  ;;  %v4276_v39 = vld [vmem:[#allocation6 + $0x450] ss:$24 sps:$4 sm:$0xff]  }
  0x83   :  { %2605 = vmatprep.subr.bf16.mxu1 %v4200_v41  ;;  %v4279_v40 = vld [vmem:[#allocation6 + $0x458] ss:$24 sps:$4 sm:$0xff]   ;;  %v4284_v41 = vld [vmem:[#allocation6 + $0x484] ss:$24 sps:$4 sm:$0xff]  }
  0x85   :  { %2434 = vmatpush1.bf16.msra.mxu0 %v4202_v42  ;;  %v4287_v42 = vld [vmem:[#allocation6 + $0x48c] ss:$24 sps:$4 sm:$0xff]  }
  0x86   :  { %2606 = vmatpush1.bf16.msra.mxu1 %v4203_v43  ;;  %2435 = vmatprep.subr.bf16.mxu0 %v4204_v44  ;;  %v4282_v43 = vld [vmem:[#allocation6 + $0x480] ss:$24 sps:$4 sm:$0xff]  }
  0x87   :  { %2607 = vmatprep.subr.bf16.mxu1 %v4206_v45  ;;  %v4285_v44 = vld [vmem:[#allocation6 + $0x488] ss:$24 sps:$4 sm:$0xff]   ;;  %v4290_v45 = vld [vmem:[#allocation6 + $0x4b4] ss:$24 sps:$4 sm:$0xff]  }
  0x89   :  { %2436 = vmatpush1.bf16.msra.mxu0 %v4208_v48  ;;  %v4291_v48 = vld [vmem:[#allocation6 + $0x4b8] ss:$24 sps:$4 sm:$0xff]  }
  0x8a   :  { %2608 = vmatpush1.bf16.msra.mxu1 %v4209_v49  ;;  %2437 = vmatprep.subr.bf16.mxu0 %v4210_v51  ;;  %v4296_v49 = vld [vmem:[#allocation6 + $0x4e4] ss:$24 sps:$4 sm:$0xff]  }
  0x8b   :  { %2609 = vmatprep.subr.bf16.mxu1 %v4212_v52  ;;  %v4299_v51 = vld [vmem:[#allocation6 + $0x4ec] ss:$24 sps:$4 sm:$0xff]   ;;  %v4294_v52 = vld [vmem:[#allocation6 + $0x4e0] ss:$24 sps:$4 sm:$0xff]  }
  0x8d   :  { %2438 = vmatpush1.bf16.msra.mxu0 %v4214_v53  ;;  %v4297_v53 = vld [vmem:[#allocation6 + $0x4e8] ss:$24 sps:$4 sm:$0xff]  }
  0x8e   :  { %2610 = vmatpush1.bf16.msra.mxu1 %v4215_v54  ;;  %2439 = vmatprep.subr.bf16.mxu0 %v4216_v55  ;;  %v4302_v54 = vld [vmem:[#allocation6 + $0x514] ss:$24 sps:$4 sm:$0xff]  }
  0x8f   :  { %2611 = vmatprep.subr.bf16.mxu1 %v4218_v56  ;;  %v4305_v55 = vld [vmem:[#allocation6 + $0x51c] ss:$24 sps:$4 sm:$0xff]   ;;  %v4300_v56 = vld [vmem:[#allocation6 + $0x510] ss:$24 sps:$4 sm:$0xff]  }
  0x91   :  { %2440 = vmatpush1.bf16.msra.mxu0 %v4220_v57  ;;  %v4303_v57 = vld [vmem:[#allocation6 + $0x518] ss:$24 sps:$4 sm:$0xff]  }
  0x92   :  { %2612 = vmatpush1.bf16.msra.mxu1 %v4221_v58  ;;  %2441 = vmatprep.subr.bf16.mxu0 %v4222_v59  ;;  %v4308_v58 = vld [vmem:[#allocation6 + $0x544] ss:$24 sps:$4 sm:$0xff]  }
  0x93   :  { %2613 = vmatprep.subr.bf16.mxu1 %v4224_v60  ;;  %v4311_v59 = vld [vmem:[#allocation6 + $0x54c] ss:$24 sps:$4 sm:$0xff]   ;;  %v4306_v60 = vld [vmem:[#allocation6 + $0x540] ss:$24 sps:$4 sm:$0xff]  }
  0x95   :  { %2442 = vmatpush1.bf16.msra.mxu0 %v4226_v61  ;;  %v4309_v61 = vld [vmem:[#allocation6 + $0x548] ss:$24 sps:$4 sm:$0xff]  }
  0x96   :  { %2614 = vmatpush1.bf16.msra.mxu1 %v4227_v62  ;;  %2443 = vmatprep.subr.bf16.mxu0 %v4228_v63  ;;  %v4314_v62 = vld [vmem:[#allocation6 + $0x574] ss:$24 sps:$4 sm:$0xff]  }
  0x97   :  { %2615 = vmatprep.subr.bf16.mxu1 %v4230_v0  ;;  %v4317_v63 = vld [vmem:[#allocation6 + $0x57c] ss:$24 sps:$4 sm:$0xff]   ;;  %v4312_v0 = vld [vmem:[#allocation6 + $0x570] ss:$24 sps:$4 sm:$0xff]  }
  0x99   :  { %2444 = vmatpush1.bf16.msra.mxu0 %v4232_v1  ;;  %v4315_v1 = vld [vmem:[#allocation6 + $0x578] ss:$24 sps:$4 sm:$0xff]  }
  0x9a   :  { %2616 = vmatpush1.bf16.msra.mxu1 %v4233_v2  ;;  %2456 = vmatprep.subr.bf16.mxu0 %v4236_v3  ;;  %v4320_v2 = vld [vmem:[#allocation6 + $0x5a4] ss:$24 sps:$4 sm:$0xff]  }
  0x9b   :  { %2628 = vmatprep.subr.bf16.mxu1 %v4239_v6  ;;  %v4323_v3 = vld [vmem:[#allocation6 + $0x5ac] ss:$24 sps:$4 sm:$0xff]  }
  0x9c   :  { %2446 = vmatmul.mubr.bf16.vlgmr.msra.gmra.mrb[0].mxu0 %v4963_v9  ;;  %v4326_v6 = vld [vmem:[#allocation6 + $0x5d4] ss:$24 sps:$4 sm:$0xff]  }
  0x9d   :  { %2618 = vmatmul.mubr.bf16.vlgmr.msra.gmra.mrb[0].mxu1 %v4963_v9  ;;  %2457 = vmatpush1.bf16.msra.mxu0 %v4234_v7  ;;  %v4329_v7 = vld [vmem:[#allocation6 + $0x5dc] ss:$24 sps:$4 sm:$0xff]  }
  0x9e   :  { %2629 = vmatpush1.bf16.msra.mxu1 %v4237_v8  ;;  %2458 = vmatprep.subr.bf16.mxu0 %v4242_v10  ;;  %v4324_v8 = vld [vmem:[#allocation6 + $0x5d0] ss:$24 sps:$4 sm:$0xff]  }
  0x9f   :  { %2630 = vmatprep.subr.bf16.mxu1 %v4245_v11  ;;  %2488 = vmatprep.mubr.bf16.mxu0 %v4967_v36  ;;  %v4327_v10 = vld [vmem:[#allocation6 + $0x5d8] ss:$24 sps:$4 sm:$0xff]   ;;  %v4332_v11 = vld [vmem:[#allocation6 + $0x604] ss:$24 sps:$4 sm:$0xff]  }
  0xa0   :  { %2660 = vmatprep.mubr.bf16.mxu1 %v4967_v36 }
  0xa1   :  { %2459 = vmatpush1.bf16.msra.mxu0 %v4240_v12  ;;  %v87_v12 = vld [vmem:[#allocation3 + $0x10] sm:$0xff] }
  0xa2   :  { %2631 = vmatpush1.bf16.msra.mxu1 %v4243_v13  ;;  %2460 = vmatprep.subr.bf16.mxu0 %v4248_v14  ;;  %v95_v13 = vld [vmem:[#allocation3 + $0x50] sm:$0xff]  ;;  %v4335_v14 = vld [vmem:[#allocation6 + $0x60c] ss:$24 sps:$4 sm:$0xff]  }
  0xa3   :  { %2632 = vmatprep.subr.bf16.mxu1 %v4251_v15  ;;  %v4330_v15 = vld [vmem:[#allocation6 + $0x600] ss:$24 sps:$4 sm:$0xff]  }
  0xa5   :  { %2461 = vmatpush1.bf16.msra.mxu0 %v4246_v16  ;;  %v4333_v16 = vld [vmem:[#allocation6 + $0x608] ss:$24 sps:$4 sm:$0xff]  }
  0xa6   :  { %2633 = vmatpush1.bf16.msra.mxu1 %v4249_v17  ;;  %2462 = vmatprep.subr.bf16.mxu0 %v4254_v18  ;;  %v4971_v17 = vpack.c.bf16 %v95_v13, %v87_v12  ;;  %v4338_v18 = vld [vmem:[#allocation6 + $0x634] ss:$24 sps:$4 sm:$0xff]   ;;  %v4416_v12 = vld [vmem:[#allocation6 + $0x8a4] ss:$24 sps:$4 sm:$0xff]  }
  0xa7   :  { %2634 = vmatprep.subr.bf16.mxu1 %v4257_v19  ;;  %v4341_v19 = vld [vmem:[#allocation6 + $0x63c] ss:$24 sps:$4 sm:$0xff]   ;;  %v4419_v13 = vld [vmem:[#allocation6 + $0x8ac] ss:$24 sps:$4 sm:$0xff]  }
  0xa9   :  { %2463 = vmatpush1.bf16.msra.mxu0 %v4252_v20  ;;  %v90_v20 = vld [vmem:[#allocation3 + $0x28] sm:$0xff] }
  0xaa   :  { %2635 = vmatpush1.bf16.msra.mxu1 %v4255_v21  ;;  %2464 = vmatprep.subr.bf16.mxu0 %v4260_v22  ;;  %v98_v21 = vld [vmem:[#allocation3 + $0x68] sm:$0xff] }
  0xab   :  { %2636 = vmatprep.subr.bf16.mxu1 %v4263_v23  ;;  %v4336_v22 = vld [vmem:[#allocation6 + $0x630] ss:$24 sps:$4 sm:$0xff]  }
  0xac   :  { %v4339_v23 = vld [vmem:[#allocation6 + $0x638] ss:$24 sps:$4 sm:$0xff]  }
  0xad   :  { %2465 = vmatpush1.bf16.msra.mxu0 %v4258_v24  ;;  %v4975_v24 = vpack.c.bf16 %v98_v21, %v90_v20  ;;  %v4423_v20 = vld [vmem:[#allocation6 + $0x8d8] ss:$24 sps:$4 sm:$0xff]   ;;  %v4428_v21 = vld [vmem:[#allocation6 + $0x904] ss:$24 sps:$4 sm:$0xff]  }
  0xae   :  { %2637 = vmatpush1.bf16.msra.mxu1 %v4261_v25  ;;  %2466 = vmatprep.subr.bf16.mxu0 %v4266_v26  ;;  %v4344_v25 = vld [vmem:[#allocation6 + $0x664] ss:$24 sps:$4 sm:$0xff]  }
  0xaf   :  { %2638 = vmatprep.subr.bf16.mxu1 %v4269_v27  ;;  %v4347_v26 = vld [vmem:[#allocation6 + $0x66c] ss:$24 sps:$4 sm:$0xff]   ;;  %v4342_v27 = vld [vmem:[#allocation6 + $0x660] ss:$24 sps:$4 sm:$0xff]  }
  0xb1   :  { %2467 = vmatpush1.bf16.msra.mxu0 %v4264_v28  ;;  %v4345_v28 = vld [vmem:[#allocation6 + $0x668] ss:$24 sps:$4 sm:$0xff]  }
  0xb2   :  { %2639 = vmatpush1.bf16.msra.mxu1 %v4267_v29  ;;  %2468 = vmatprep.subr.bf16.mxu0 %v4272_v30  ;;  %v4350_v29 = vld [vmem:[#allocation6 + $0x694] ss:$24 sps:$4 sm:$0xff]  }
  0xb3   :  { %2640 = vmatprep.subr.bf16.mxu1 %v4275_v31  ;;  %v4353_v30 = vld [vmem:[#allocation6 + $0x69c] ss:$24 sps:$4 sm:$0xff]   ;;  %v4348_v31 = vld [vmem:[#allocation6 + $0x690] ss:$24 sps:$4 sm:$0xff]  }
  0xb5   :  { %2469 = vmatpush1.bf16.msra.mxu0 %v4270_v34  ;;  %v4359_v34 = vld [vmem:[#allocation6 + $0x6cc] ss:$24 sps:$4 sm:$0xff]  }
  0xb6   :  { %2641 = vmatpush1.bf16.msra.mxu1 %v4273_v35  ;;  %2470 = vmatprep.subr.bf16.mxu0 %v4278_v37  ;;  %v4354_v35 = vld [vmem:[#allocation6 + $0x6c0] ss:$24 sps:$4 sm:$0xff]  }
  0xb7   :  { %2642 = vmatprep.subr.bf16.mxu1 %v4281_v38  ;;  %v4357_v37 = vld [vmem:[#allocation6 + $0x6c8] ss:$24 sps:$4 sm:$0xff]   ;;  %v4362_v38 = vld [vmem:[#allocation6 + $0x6f4] ss:$24 sps:$4 sm:$0xff]  }
  0xb9   :  { %2471 = vmatpush1.bf16.msra.mxu0 %v4276_v39  ;;  %v4365_v39 = vld [vmem:[#allocation6 + $0x6fc] ss:$24 sps:$4 sm:$0xff]  }
  0xba   :  { %2643 = vmatpush1.bf16.msra.mxu1 %v4279_v40  ;;  %2472 = vmatprep.subr.bf16.mxu0 %v4284_v41  ;;  %v4360_v40 = vld [vmem:[#allocation6 + $0x6f0] ss:$24 sps:$4 sm:$0xff]  }
  0xbb   :  { %2644 = vmatprep.subr.bf16.mxu1 %v4287_v42  ;;  %v4363_v41 = vld [vmem:[#allocation6 + $0x6f8] ss:$24 sps:$4 sm:$0xff]   ;;  %v4368_v42 = vld [vmem:[#allocation6 + $0x724] ss:$24 sps:$4 sm:$0xff]  }
  0xbd   :  { %2473 = vmatpush1.bf16.msra.mxu0 %v4282_v43  ;;  %v4371_v43 = vld [vmem:[#allocation6 + $0x72c] ss:$24 sps:$4 sm:$0xff]  }
  0xbe   :  { %2645 = vmatpush1.bf16.msra.mxu1 %v4285_v44  ;;  %2474 = vmatprep.subr.bf16.mxu0 %v4290_v45  ;;  %v4366_v44 = vld [vmem:[#allocation6 + $0x720] ss:$24 sps:$4 sm:$0xff]  }
  0xbf   :  { %2646 = vmatprep.subr.bf16.mxu1 %v4293_v46  ;;  %v4369_v45 = vld [vmem:[#allocation6 + $0x728] ss:$24 sps:$4 sm:$0xff]   ;;  %v4374_v46 = vld [vmem:[#allocation6 + $0x754] ss:$24 sps:$4 sm:$0xff]  }
  0xc1   :  { %2475 = vmatpush1.bf16.msra.mxu0 %v4288_v47  ;;  %v4377_v47 = vld [vmem:[#allocation6 + $0x75c] ss:$24 sps:$4 sm:$0xff]  }
  0xc2   :  { %2647 = vmatpush1.bf16.msra.mxu1 %v4291_v48  ;;  %2476 = vmatprep.subr.bf16.mxu0 %v4296_v49  ;;  %v4372_v48 = vld [vmem:[#allocation6 + $0x750] ss:$24 sps:$4 sm:$0xff]  }
  0xc3   :  { %2648 = vmatprep.subr.bf16.mxu1 %v4299_v51  ;;  %v4375_v49 = vld [vmem:[#allocation6 + $0x758] ss:$24 sps:$4 sm:$0xff]   ;;  %v4380_v51 = vld [vmem:[#allocation6 + $0x784] ss:$24 sps:$4 sm:$0xff]  }
  0xc5   :  { %2477 = vmatpush1.bf16.msra.mxu0 %v4294_v52  ;;  %v4383_v52 = vld [vmem:[#allocation6 + $0x78c] ss:$24 sps:$4 sm:$0xff]  }
  0xc6   :  { %2649 = vmatpush1.bf16.msra.mxu1 %v4297_v53  ;;  %2478 = vmatprep.subr.bf16.mxu0 %v4302_v54  ;;  %v4378_v53 = vld [vmem:[#allocation6 + $0x780] ss:$24 sps:$4 sm:$0xff]  }
  0xc7   :  { %2650 = vmatprep.subr.bf16.mxu1 %v4305_v55  ;;  %v4381_v54 = vld [vmem:[#allocation6 + $0x788] ss:$24 sps:$4 sm:$0xff]   ;;  %v4386_v55 = vld [vmem:[#allocation6 + $0x7b4] ss:$24 sps:$4 sm:$0xff]  }
  0xc9   :  { %2479 = vmatpush1.bf16.msra.mxu0 %v4300_v56  ;;  %v4389_v56 = vld [vmem:[#allocation6 + $0x7bc] ss:$24 sps:$4 sm:$0xff]  }
  0xca   :  { %2651 = vmatpush1.bf16.msra.mxu1 %v4303_v57  ;;  %2480 = vmatprep.subr.bf16.mxu0 %v4308_v58  ;;  %v4384_v57 = vld [vmem:[#allocation6 + $0x7b0] ss:$24 sps:$4 sm:$0xff]  }
  0xcb   :  { %2652 = vmatprep.subr.bf16.mxu1 %v4311_v59  ;;  %v4387_v58 = vld [vmem:[#allocation6 + $0x7b8] ss:$24 sps:$4 sm:$0xff]   ;;  %v4392_v59 = vld [vmem:[#allocation6 + $0x7e4] ss:$24 sps:$4 sm:$0xff]  }
  0xcd   :  { %2481 = vmatpush1.bf16.msra.mxu0 %v4306_v60  ;;  %v4395_v60 = vld [vmem:[#allocation6 + $0x7ec] ss:$24 sps:$4 sm:$0xff]  }
  0xce   :  { %2653 = vmatpush1.bf16.msra.mxu1 %v4309_v61  ;;  %2482 = vmatprep.subr.bf16.mxu0 %v4314_v62  ;;  %v4390_v61 = vld [vmem:[#allocation6 + $0x7e0] ss:$24 sps:$4 sm:$0xff]  }
  0xcf   :  { %2654 = vmatprep.subr.bf16.mxu1 %v4317_v63  ;;  %v4393_v62 = vld [vmem:[#allocation6 + $0x7e8] ss:$24 sps:$4 sm:$0xff]   ;;  %v4398_v63 = vld [vmem:[#allocation6 + $0x814] ss:$24 sps:$4 sm:$0xff]  }
  0xd1   :  { %2483 = vmatpush1.bf16.msra.mxu0 %v4312_v0  ;;  %v4401_v0 = vld [vmem:[#allocation6 + $0x81c] ss:$24 sps:$4 sm:$0xff]  }
  0xd2   :  { %2655 = vmatpush1.bf16.msra.mxu1 %v4315_v1  ;;  %2484 = vmatprep.subr.bf16.mxu0 %v4320_v2  ;;  %v4396_v1 = vld [vmem:[#allocation6 + $0x810] ss:$24 sps:$4 sm:$0xff]  }
  0xd3   :  { %2656 = vmatprep.subr.bf16.mxu1 %v4323_v3  ;;  %v4399_v2 = vld [vmem:[#allocation6 + $0x818] ss:$24 sps:$4 sm:$0xff]   ;;  %v4404_v3 = vld [vmem:[#allocation6 + $0x844] ss:$24 sps:$4 sm:$0xff]  }
  0xd5   :  { %2485 = vmatpush1.bf16.msra.mxu0 %v4318_v4  ;;  %v4407_v4 = vld [vmem:[#allocation6 + $0x84c] ss:$24 sps:$4 sm:$0xff]  }
  0xd6   :  { %2657 = vmatpush1.bf16.msra.mxu1 %v4321_v5  ;;  %2486 = vmatprep.subr.bf16.mxu0 %v4326_v6  ;;  %v4402_v5 = vld [vmem:[#allocation6 + $0x840] ss:$24 sps:$4 sm:$0xff]  }
  0xd7   :  { %2658 = vmatprep.subr.bf16.mxu1 %v4329_v7  ;;  %v4405_v6 = vld [vmem:[#allocation6 + $0x848] ss:$24 sps:$4 sm:$0xff]   ;;  %v4410_v7 = vld [vmem:[#allocation6 + $0x874] ss:$24 sps:$4 sm:$0xff]  }
  0xd9   :  { %2487 = vmatpush1.bf16.msra.mxu0 %v4324_v8  ;;  %v4413_v8 = vld [vmem:[#allocation6 + $0x87c] ss:$24 sps:$4 sm:$0xff]  }
  0xda   :  { %2659 = vmatpush1.bf16.msra.mxu1 %v4327_v10  ;;  %2499 = vmatprep.subr.bf16.mxu0 %v4332_v11  ;;  %v4408_v10 = vld [vmem:[#allocation6 + $0x870] ss:$24 sps:$4 sm:$0xff]  }
  0xdb   :  { %2671 = vmatprep.subr.bf16.mxu1 %v4335_v14  ;;  %v4411_v11 = vld [vmem:[#allocation6 + $0x878] ss:$24 sps:$4 sm:$0xff]  }
  0xdc   :  { %2489 = vmatmul.mubr.bf16.vlgmr.msra.gmra.mrb[0].mxu0 %v4971_v17  ;;  %v4414_v14 = vld [vmem:[#allocation6 + $0x8a0] ss:$24 sps:$4 sm:$0xff]  }
  0xdd   :  { %2661 = vmatmul.mubr.bf16.vlgmr.msra.gmra.mrb[0].mxu1 %v4971_v17  ;;  %2500 = vmatpush1.bf16.msra.mxu0 %v4330_v15  ;;  %v4417_v15 = vld [vmem:[#allocation6 + $0x8a8] ss:$24 sps:$4 sm:$0xff]  }
  0xde   :  { %2672 = vmatpush1.bf16.msra.mxu1 %v4333_v16  ;;  %2501 = vmatprep.subr.bf16.mxu0 %v4338_v18  ;;  %v4422_v16 = vld [vmem:[#allocation6 + $0x8d4] ss:$24 sps:$4 sm:$0xff]  }
  0xdf   :  { %2673 = vmatprep.subr.bf16.mxu1 %v4341_v19  ;;  %2531 = vmatprep.mubr.bf16.mxu0 %v4975_v24  ;;  %v4425_v18 = vld [vmem:[#allocation6 + $0x8dc] ss:$24 sps:$4 sm:$0xff]   ;;  %v4420_v19 = vld [vmem:[#allocation6 + $0x8d0] ss:$24 sps:$4 sm:$0xff]  }
  0xe0   :  { %2703 = vmatprep.mubr.bf16.mxu1 %v4975_v24 }
  0xe1   :  { %2502 = vmatpush1.bf16.msra.mxu0 %v4336_v22  ;;  %v89_v22 = vld [vmem:[#allocation3 + $0x20] sm:$0xff] }
  0xe2   :  { %2674 = vmatpush1.bf16.msra.mxu1 %v4339_v23  ;;  %2503 = vmatprep.subr.bf16.mxu0 %v4344_v25  ;;  %v97_v23 = vld [vmem:[#allocation3 + $0x60] sm:$0xff] }
  0xe3   :  { %2675 = vmatprep.subr.bf16.mxu1 %v4347_v26  ;;  %v4431_v25 = vld [vmem:[#allocation6 + $0x90c] ss:$24 sps:$4 sm:$0xff]   ;;  %v4426_v26 = vld [vmem:[#allocation6 + $0x900] ss:$24 sps:$4 sm:$0xff]  }
  0xe5   :  { %2504 = vmatpush1.bf16.msra.mxu0 %v4342_v27  ;;  %v4429_v27 = vld [vmem:[#allocation6 + $0x908] ss:$24 sps:$4 sm:$0xff]  }
  0xe6   :  { %2676 = vmatpush1.bf16.msra.mxu1 %v4345_v28  ;;  %2505 = vmatprep.subr.bf16.mxu0 %v4350_v29  ;;  %v4979_v28 = vpack.c.bf16 %v97_v23, %v89_v22  ;;  %v92_v29 = vld [vmem:[#allocation3 + $0x38] sm:$0xff]  ;;  %v4504_v22 = vld [vmem:[#allocation6 + $0xb70] ss:$24 sps:$4 sm:$0xff]  }
  0xe7   :  { %2677 = vmatprep.subr.bf16.mxu1 %v4353_v30  ;;  %v100_v30 = vld [vmem:[#allocation3 + $0x78] sm:$0xff] }
  0xe8   :  { %v4507_v23 = vld [vmem:[#allocation6 + $0xb78] ss:$24 sps:$4 sm:$0xff]  }
  0xe9   :  { %2506 = vmatpush1.bf16.msra.mxu0 %v4348_v31  ;;  %v4434_v31 = vld [vmem:[#allocation6 + $0x934] ss:$24 sps:$4 sm:$0xff]  }
  0xea   :  { %2678 = vmatpush1.bf16.msra.mxu1 %v4351_v32  ;;  %2507 = vmatprep.subr.bf16.mxu0 %v4356_v33  ;;  %v4437_v32 = vld [vmem:[#allocation6 + $0x93c] ss:$24 sps:$4 sm:$0xff]   ;;  %v4981_v33 = vpack.c.bf16 %v100_v30, %v92_v29  ;;  %v4513_v29 = vld [vmem:[#allocation6 + $0xba8] ss:$24 sps:$4 sm:$0xff]  }
  0xeb   :  { %2679 = vmatprep.subr.bf16.mxu1 %v4359_v34  ;;  %v4432_v34 = vld [vmem:[#allocation6 + $0x930] ss:$24 sps:$4 sm:$0xff]   ;;  %v4518_v30 = vld [vmem:[#allocation6 + $0xbd4] ss:$24 sps:$4 sm:$0xff]  }
  0xed   :  { %2508 = vmatpush1.bf16.msra.mxu0 %v4354_v35  ;;  %v4435_v35 = vld [vmem:[#allocation6 + $0x938] ss:$24 sps:$4 sm:$0xff]  }
  0xee   :  { %2680 = vmatpush1.bf16.msra.mxu1 %v4357_v37  ;;  %2509 = vmatprep.subr.bf16.mxu0 %v4362_v38  ;;  %v4440_v37 = vld [vmem:[#allocation6 + $0x964] ss:$24 sps:$4 sm:$0xff]  }
  0xef   :  { %2681 = vmatprep.subr.bf16.mxu1 %v4365_v39  ;;  %v4443_v38 = vld [vmem:[#allocation6 + $0x96c] ss:$24 sps:$4 sm:$0xff]   ;;  %v4438_v39 = vld [vmem:[#allocation6 + $0x960] ss:$24 sps:$4 sm:$0xff]  }
  0xf1   :  { %2510 = vmatpush1.bf16.msra.mxu0 %v4360_v40  ;;  %v4441_v40 = vld [vmem:[#allocation6 + $0x968] ss:$24 sps:$4 sm:$0xff]  }
  0xf2   :  { %2682 = vmatpush1.bf16.msra.mxu1 %v4363_v41  ;;  %2511 = vmatprep.subr.bf16.mxu0 %v4368_v42  ;;  %v4446_v41 = vld [vmem:[#allocation6 + $0x994] ss:$24 sps:$4 sm:$0xff]  }
  0xf3   :  { %2683 = vmatprep.subr.bf16.mxu1 %v4371_v43  ;;  %v4449_v42 = vld [vmem:[#allocation6 + $0x99c] ss:$24 sps:$4 sm:$0xff]   ;;  %v4444_v43 = vld [vmem:[#allocation6 + $0x990] ss:$24 sps:$4 sm:$0xff]  }
  0xf5   :  { %2512 = vmatpush1.bf16.msra.mxu0 %v4366_v44  ;;  %v4447_v44 = vld [vmem:[#allocation6 + $0x998] ss:$24 sps:$4 sm:$0xff]  }
  0xf6   :  { %2684 = vmatpush1.bf16.msra.mxu1 %v4369_v45  ;;  %2513 = vmatprep.subr.bf16.mxu0 %v4374_v46  ;;  %v4452_v45 = vld [vmem:[#allocation6 + $0x9c4] ss:$24 sps:$4 sm:$0xff]  }
  0xf7   :  { %2685 = vmatprep.subr.bf16.mxu1 %v4377_v47  ;;  %v4455_v46 = vld [vmem:[#allocation6 + $0x9cc] ss:$24 sps:$4 sm:$0xff]   ;;  %v4450_v47 = vld [vmem:[#allocation6 + $0x9c0] ss:$24 sps:$4 sm:$0xff]  }
  0xf9   :  { %2514 = vmatpush1.bf16.msra.mxu0 %v4372_v48  ;;  %v4453_v48 = vld [vmem:[#allocation6 + $0x9c8] ss:$24 sps:$4 sm:$0xff]  }
  0xfa   :  { %2686 = vmatpush1.bf16.msra.mxu1 %v4375_v49  ;;  %2515 = vmatprep.subr.bf16.mxu0 %v4380_v51  ;;  %v4458_v49 = vld [vmem:[#allocation6 + $0x9f4] ss:$24 sps:$4 sm:$0xff]  }
  0xfb   :  { %2687 = vmatprep.subr.bf16.mxu1 %v4383_v52  ;;  %v4461_v51 = vld [vmem:[#allocation6 + $0x9fc] ss:$24 sps:$4 sm:$0xff]   ;;  %v4456_v52 = vld [vmem:[#allocation6 + $0x9f0] ss:$24 sps:$4 sm:$0xff]  }
  0xfd   :  { %2516 = vmatpush1.bf16.msra.mxu0 %v4378_v53  ;;  %v4459_v53 = vld [vmem:[#allocation6 + $0x9f8] ss:$24 sps:$4 sm:$0xff]  }
  0xfe   :  { %2688 = vmatpush1.bf16.msra.mxu1 %v4381_v54  ;;  %2517 = vmatprep.subr.bf16.mxu0 %v4386_v55  ;;  %v4464_v54 = vld [vmem:[#allocation6 + $0xa24] ss:$24 sps:$4 sm:$0xff]  }
  0xff   :  { %2689 = vmatprep.subr.bf16.mxu1 %v4389_v56  ;;  %v4467_v55 = vld [vmem:[#allocation6 + $0xa2c] ss:$24 sps:$4 sm:$0xff]   ;;  %v4462_v56 = vld [vmem:[#allocation6 + $0xa20] ss:$24 sps:$4 sm:$0xff]  }
 0x101   :  { %2518 = vmatpush1.bf16.msra.mxu0 %v4384_v57  ;;  %v4465_v57 = vld [vmem:[#allocation6 + $0xa28] ss:$24 sps:$4 sm:$0xff]  }
 0x102   :  { %2690 = vmatpush1.bf16.msra.mxu1 %v4387_v58  ;;  %2519 = vmatprep.subr.bf16.mxu0 %v4392_v59  ;;  %v4470_v58 = vld [vmem:[#allocation6 + $0xa54] ss:$24 sps:$4 sm:$0xff]  }
 0x103   :  { %2691 = vmatprep.subr.bf16.mxu1 %v4395_v60  ;;  %v4473_v59 = vld [vmem:[#allocation6 + $0xa5c] ss:$24 sps:$4 sm:$0xff]   ;;  %v4468_v60 = vld [vmem:[#allocation6 + $0xa50] ss:$24 sps:$4 sm:$0xff]  }
 0x105   :  { %2520 = vmatpush1.bf16.msra.mxu0 %v4390_v61  ;;  %v4471_v61 = vld [vmem:[#allocation6 + $0xa58] ss:$24 sps:$4 sm:$0xff]  }
 0x106   :  { %2692 = vmatpush1.bf16.msra.mxu1 %v4393_v62  ;;  %2521 = vmatprep.subr.bf16.mxu0 %v4398_v63  ;;  %v4476_v62 = vld [vmem:[#allocation6 + $0xa84] ss:$24 sps:$4 sm:$0xff]  }
 0x107   :  { %2693 = vmatprep.subr.bf16.mxu1 %v4401_v0  ;;  %v4479_v63 = vld [vmem:[#allocation6 + $0xa8c] ss:$24 sps:$4 sm:$0xff]   ;;  %v4474_v0 = vld [vmem:[#allocation6 + $0xa80] ss:$24 sps:$4 sm:$0xff]  }
 0x109   :  { %2522 = vmatpush1.bf16.msra.mxu0 %v4396_v1  ;;  %v4477_v1 = vld [vmem:[#allocation6 + $0xa88] ss:$24 sps:$4 sm:$0xff]  }
 0x10a   :  { %2694 = vmatpush1.bf16.msra.mxu1 %v4399_v2  ;;  %2523 = vmatprep.subr.bf16.mxu0 %v4404_v3  ;;  %v4482_v2 = vld [vmem:[#allocation6 + $0xab4] ss:$24 sps:$4 sm:$0xff]  }
 0x10b   :  { %2695 = vmatprep.subr.bf16.mxu1 %v4407_v4  ;;  %v4485_v3 = vld [vmem:[#allocation6 + $0xabc] ss:$24 sps:$4 sm:$0xff]   ;;  %v4480_v4 = vld [vmem:[#allocation6 + $0xab0] ss:$24 sps:$4 sm:$0xff]  }
 0x10d   :  { %2524 = vmatpush1.bf16.msra.mxu0 %v4402_v5  ;;  %v4483_v5 = vld [vmem:[#allocation6 + $0xab8] ss:$24 sps:$4 sm:$0xff]  }
 0x10e   :  { %2696 = vmatpush1.bf16.msra.mxu1 %v4405_v6  ;;  %2525 = vmatprep.subr.bf16.mxu0 %v4410_v7  ;;  %v4488_v6 = vld [vmem:[#allocation6 + $0xae4] ss:$24 sps:$4 sm:$0xff]  }
 0x10f   :  { %2697 = vmatprep.subr.bf16.mxu1 %v4413_v8  ;;  %v4491_v7 = vld [vmem:[#allocation6 + $0xaec] ss:$24 sps:$4 sm:$0xff]   ;;  %v4486_v8 = vld [vmem:[#allocation6 + $0xae0] ss:$24 sps:$4 sm:$0xff]  }
 0x111   :  { %2526 = vmatpush1.bf16.msra.mxu0 %v4408_v10  ;;  %v4489_v10 = vld [vmem:[#allocation6 + $0xae8] ss:$24 sps:$4 sm:$0xff]  }
 0x112   :  { %2698 = vmatpush1.bf16.msra.mxu1 %v4411_v11  ;;  %2527 = vmatprep.subr.bf16.mxu0 %v4416_v12  ;;  %v4494_v11 = vld [vmem:[#allocation6 + $0xb14] ss:$24 sps:$4 sm:$0xff]  }
 0x113   :  { %2699 = vmatprep.subr.bf16.mxu1 %v4419_v13  ;;  %v4497_v12 = vld [vmem:[#allocation6 + $0xb1c] ss:$24 sps:$4 sm:$0xff]   ;;  %v4492_v13 = vld [vmem:[#allocation6 + $0xb10] ss:$24 sps:$4 sm:$0xff]  }
 0x115   :  { %2528 = vmatpush1.bf16.msra.mxu0 %v4414_v14  ;;  %v4495_v14 = vld [vmem:[#allocation6 + $0xb18] ss:$24 sps:$4 sm:$0xff]  }
 0x116   :  { %2700 = vmatpush1.bf16.msra.mxu1 %v4417_v15  ;;  %2529 = vmatprep.subr.bf16.mxu0 %v4422_v16  ;;  %v4500_v15 = vld [vmem:[#allocation6 + $0xb44] ss:$24 sps:$4 sm:$0xff]  }
 0x117   :  { %2701 = vmatprep.subr.bf16.mxu1 %v4425_v18  ;;  %v4503_v16 = vld [vmem:[#allocation6 + $0xb4c] ss:$24 sps:$4 sm:$0xff]   ;;  %v4498_v18 = vld [vmem:[#allocation6 + $0xb40] ss:$24 sps:$4 sm:$0xff]  }
 0x119   :  { %2530 = vmatpush1.bf16.msra.mxu0 %v4420_v19  ;;  %v4501_v19 = vld [vmem:[#allocation6 + $0xb48] ss:$24 sps:$4 sm:$0xff]  }
 0x11a   :  { %2702 = vmatpush1.bf16.msra.mxu1 %v4423_v20  ;;  %2542 = vmatprep.subr.bf16.mxu0 %v4428_v21  ;;  %v4506_v20 = vld [vmem:[#allocation6 + $0xb74] ss:$24 sps:$4 sm:$0xff]  }
 0x11b   :  { %2714 = vmatprep.subr.bf16.mxu1 %v4431_v25  ;;  %v4509_v21 = vld [vmem:[#allocation6 + $0xb7c] ss:$24 sps:$4 sm:$0xff]  }
 0x11c   :  { %2532 = vmatmul.mubr.bf16.vlgmr.msra.gmra.mrb[0].mxu0 %v4979_v28  ;;  %v4512_v25 = vld [vmem:[#allocation6 + $0xba4] ss:$24 sps:$4 sm:$0xff]  }
 0x11d   :  { %2704 = vmatmul.mubr.bf16.vlgmr.msra.gmra.mrb[0].mxu1 %v4979_v28  ;;  %2543 = vmatpush1.bf16.msra.mxu0 %v4426_v26  ;;  %v4515_v26 = vld [vmem:[#allocation6 + $0xbac] ss:$24 sps:$4 sm:$0xff]  }
 0x11e   :  { %2715 = vmatpush1.bf16.msra.mxu1 %v4429_v27  ;;  %2544 = vmatprep.subr.bf16.mxu0 %v4434_v31  ;;  %v4510_v27 = vld [vmem:[#allocation6 + $0xba0] ss:$24 sps:$4 sm:$0xff]   ;;  %v4521_v31 = vld [vmem:[#allocation6 + $0xbdc] ss:$24 sps:$4 sm:$0xff]  }
 0x11f   :  { %2716 = vmatprep.subr.bf16.mxu1 %v4437_v32  ;;  %2574 = vmatprep.mubr.bf16.mxu0 %v4981_v33  ;;  %v4516_v32 = vld [vmem:[#allocation6 + $0xbd0] ss:$24 sps:$4 sm:$0xff]  }
 0x120   :  { %2746 = vmatprep.mubr.bf16.mxu1 %v4981_v33 }
 0x121   :  { %2545 = vmatpush1.bf16.msra.mxu0 %v4432_v34  ;;  %v4519_v34 = vld [vmem:[#allocation6 + $0xbd8] ss:$24 sps:$4 sm:$0xff]  }
 0x122   :  { %2717 = vmatpush1.bf16.msra.mxu1 %v4435_v35  ;;  %2546 = vmatprep.subr.bf16.mxu0 %v4440_v37  ;;  %v91_v35 = vld [vmem:[#allocation3 + $0x30] sm:$0xff] }
 0x123   :  { %2718 = vmatprep.subr.bf16.mxu1 %v4443_v38  ;;  %v99_v37 = vld [vmem:[#allocation3 + $0x70] sm:$0xff] }
 0x124   :  { %v4524_v38 = vld [vmem:[#allocation6 + $0x14] ss:$24 sps:$4 sm:$0xff]  }
 0x125   :  { %2547 = vmatpush1.bf16.msra.mxu0 %v4438_v39  ;;  %v4987_v39 = vpack.c.bf16 %v99_v37, %v91_v35  ;;  %v4555_v35 = vld [vmem:[#allocation6 + $0x220] ss:$24 sps:$4 sm:$0xff]  }
 0x126   :  { %2719 = vmatpush1.bf16.msra.mxu1 %v4441_v40  ;;  %2548 = vmatprep.subr.bf16.mxu0 %v4446_v41  ;;  %v4522_v40 = vld [vmem:[#allocation6 + $0x10] ss:$24 sps:$4 sm:$0xff]   ;;  %v4527_v41 = vld [vmem:[#allocation6 + $0x44] ss:$24 sps:$4 sm:$0xff]  }
 0x127   :  { %2720 = vmatprep.subr.bf16.mxu1 %v4449_v42  ;;  %v4525_v42 = vld [vmem:[#allocation6 + $0x40] ss:$24 sps:$4 sm:$0xff]  }
 0x129   :  { %2549 = vmatpush1.bf16.msra.mxu0 %v4444_v43  ;;  %v4530_v43 = vld [vmem:[#allocation6 + $0x74] ss:$24 sps:$4 sm:$0xff]  }
 0x12a   :  { %2721 = vmatpush1.bf16.msra.mxu1 %v4447_v44  ;;  %2550 = vmatprep.subr.bf16.mxu0 %v4452_v45  ;;  %v4528_v44 = vld [vmem:[#allocation6 + $0x70] ss:$24 sps:$4 sm:$0xff]   ;;  %v4533_v45 = vld [vmem:[#allocation6 + $0xa4] ss:$24 sps:$4 sm:$0xff]  }
 0x12b   :  { %2722 = vmatprep.subr.bf16.mxu1 %v4455_v46  ;;  %v4531_v46 = vld [vmem:[#allocation6 + $0xa0] ss:$24 sps:$4 sm:$0xff]  }
 0x12d   :  { %2551 = vmatpush1.bf16.msra.mxu0 %v4450_v47  ;;  %v4536_v47 = vld [vmem:[#allocation6 + $0xd4] ss:$24 sps:$4 sm:$0xff]  }
 0x12e   :  { %2723 = vmatpush1.bf16.msra.mxu1 %v4453_v48  ;;  %2552 = vmatprep.subr.bf16.mxu0 %v4458_v49  ;;  %v4534_v48 = vld [vmem:[#allocation6 + $0xd0] ss:$24 sps:$4 sm:$0xff]   ;;  %v4539_v49 = vld [vmem:[#allocation6 + $0x104] ss:$24 sps:$4 sm:$0xff]  }
 0x12f   :  { %2724 = vmatprep.subr.bf16.mxu1 %v4461_v51  ;;  %v4537_v51 = vld [vmem:[#allocation6 + $0x100] ss:$24 sps:$4 sm:$0xff]  }
 0x131   :  { %2553 = vmatpush1.bf16.msra.mxu0 %v4456_v52  ;;  %v4542_v52 = vld [vmem:[#allocation6 + $0x134] ss:$24 sps:$4 sm:$0xff]  }
 0x132   :  { %2725 = vmatpush1.bf16.msra.mxu1 %v4459_v53  ;;  %2554 = vmatprep.subr.bf16.mxu0 %v4464_v54  ;;  %v3045_v53 = vld [vmem:[#allocation9 + $0x8] sm:$0xff] }
 0x133   :  { %2726 = vmatprep.subr.bf16.mxu1 %v4467_v55  ;;  %v4540_v54 = vld [vmem:[#allocation6 + $0x130] ss:$24 sps:$4 sm:$0xff]  }
 0x135   :  { %2555 = vmatpush1.bf16.msra.mxu0 %v4462_v56  ;;  %v3044_v56 = vld [vmem:[#allocation9] sm:$0xff] }
 0x136   :  { %2727 = vmatpush1.bf16.msra.mxu1 %v4465_v57  ;;  %2556 = vmatprep.subr.bf16.mxu0 %v4470_v58  ;;  %v4545_v57 = vld [vmem:[#allocation6 + $0x164] ss:$24 sps:$4 sm:$0xff]  }
 0x137   :  { %2728 = vmatprep.subr.bf16.mxu1 %v4473_v59  ;;  %v3046_v58 = vld [vmem:[#allocation9 + $0x10] sm:$0xff] }
 0x138   :  { %v3888_v59 = vpack.c.bf16 %v3046_v58, %v3044_v56  ;;  %v4566_v56 = vld [vmem:[#allocation6 + $0x2b4] ss:$24 sps:$4 sm:$0xff]  }
 0x139   :  { %2557 = vmatpush1.bf16.msra.mxu0 %v4468_v60  ;;  %v3049_v60 = vld [vmem:[#allocation9 + $0x28] sm:$0xff] }
 0x13a   :  { %2729 = vmatpush1.bf16.msra.mxu1 %v4471_v61  ;;  %2558 = vmatprep.subr.bf16.mxu0 %v4476_v62  ;;  %v3051_v61 = vld [vmem:[#allocation9 + $0x38] sm:$0xff] }
 0x13b   :  { %2730 = vmatprep.subr.bf16.mxu1 %v4479_v63  ;;  %v4543_v62 = vld [vmem:[#allocation6 + $0x160] ss:$24 sps:$4 sm:$0xff]   ;;  %v3890_v63 = vpack.c.bf16 %v3051_v61, %v3049_v60  ;;  %v4564_v61 = vld [vmem:[#allocation6 + $0x2b0] ss:$24 sps:$4 sm:$0xff]  }
 0x13c   :  { %v3079_v60 = vld [vmem:[#allocation9 + $0x118] sm:$0xff] }
 0x13d   :  { %2559 = vmatpush1.bf16.msra.mxu0 %v4474_v0  ;;  %v3048_v0 = vld [vmem:[#allocation9 + $0x20] sm:$0xff] }
 0x13e   :  { %2731 = vmatpush1.bf16.msra.mxu1 %v4477_v1  ;;  %2560 = vmatprep.subr.bf16.mxu0 %v4482_v2  ;;  %v4548_v1 = vld [vmem:[#allocation6 + $0x194] ss:$24 sps:$4 sm:$0xff]  }
 0x13f   :  { %2732 = vmatprep.subr.bf16.mxu1 %v4485_v3  ;;  %v3050_v2 = vld [vmem:[#allocation9 + $0x30] sm:$0xff] }
 0x140   :  { %v3892_v3 = vpack.c.bf16 %v3050_v2, %v3048_v0  ;;  %v4569_v0 = vld [vmem:[#allocation6 + $0x2e4] ss:$24 sps:$4 sm:$0xff]  }
 0x141   :  { %2561 = vmatpush1.bf16.msra.mxu0 %v4480_v4  ;;  %v3053_v4 = vld [vmem:[#allocation9 + $0x48] sm:$0xff] }
 0x142   :  { %2733 = vmatpush1.bf16.msra.mxu1 %v4483_v5  ;;  %2562 = vmatprep.subr.bf16.mxu0 %v4488_v6  ;;  %v3055_v5 = vld [vmem:[#allocation9 + $0x58] sm:$0xff]  ;;  %v4546_v6 = vld [vmem:[#allocation6 + $0x190] ss:$24 sps:$4 sm:$0xff]  }
 0x143   :  { %2734 = vmatprep.subr.bf16.mxu1 %v4491_v7  ;;  %v3894_v7 = vpack.c.bf16 %v3055_v5, %v3053_v4  ;;  %v3083_v4 = vld [vmem:[#allocation9 + $0x138] sm:$0xff] }
 0x144   :  { %v4567_v5 = vld [vmem:[#allocation6 + $0x2e0] ss:$24 sps:$4 sm:$0xff]  }
 0x145   :  { %2563 = vmatpush1.bf16.msra.mxu0 %v4486_v8  ;;  %v3052_v8 = vld [vmem:[#allocation9 + $0x40] sm:$0xff] }
 0x146   :  { %2735 = vmatpush1.bf16.msra.mxu1 %v4489_v10  ;;  %2564 = vmatprep.subr.bf16.mxu0 %v4494_v11  ;;  %v4551_v10 = vld [vmem:[#allocation6 + $0x1c4] ss:$24 sps:$4 sm:$0xff]  }
 0x147   :  { %2736 = vmatprep.subr.bf16.mxu1 %v4497_v12  ;;  %v3054_v11 = vld [vmem:[#allocation9 + $0x50] sm:$0xff] }
 0x148   :  { %v3896_v12 = vpack.c.bf16 %v3054_v11, %v3052_v8  ;;  %v4572_v8 = vld [vmem:[#allocation6 + $0x314] ss:$24 sps:$4 sm:$0xff]  }
 0x149   :  { %2565 = vmatpush1.bf16.msra.mxu0 %v4492_v13  ;;  %v3057_v13 = vld [vmem:[#allocation9 + $0x68] sm:$0xff] }
 0x14a   :  { %2737 = vmatpush1.bf16.msra.mxu1 %v4495_v14  ;;  %2566 = vmatprep.subr.bf16.mxu0 %v4500_v15  ;;  %v3059_v14 = vld [vmem:[#allocation9 + $0x78] sm:$0xff] }
 0x14b   :  { %2738 = vmatprep.subr.bf16.mxu1 %v4503_v16  ;;  %v4549_v15 = vld [vmem:[#allocation6 + $0x1c0] ss:$24 sps:$4 sm:$0xff]   ;;  %v3898_v16 = vpack.c.bf16 %v3059_v14, %v3057_v13  ;;  %v4570_v14 = vld [vmem:[#allocation6 + $0x310] ss:$24 sps:$4 sm:$0xff]  }
 0x14c   :  { %v3087_v13 = vld [vmem:[#allocation9 + $0x158] sm:$0xff] }
 0x14d   :  { %2567 = vmatpush1.bf16.msra.mxu0 %v4498_v18  ;;  %v3056_v18 = vld [vmem:[#allocation9 + $0x60] sm:$0xff] }
 0x14e   :  { %2739 = vmatpush1.bf16.msra.mxu1 %v4501_v19  ;;  %2568 = vmatprep.subr.bf16.mxu0 %v4506_v20  ;;  %v4554_v19 = vld [vmem:[#allocation6 + $0x1f4] ss:$24 sps:$4 sm:$0xff]  }
 0x14f   :  { %2740 = vmatprep.subr.bf16.mxu1 %v4509_v21  ;;  %v3058_v20 = vld [vmem:[#allocation9 + $0x70] sm:$0xff] }
 0x150   :  { %v3900_v21 = vpack.c.bf16 %v3058_v20, %v3056_v18  ;;  %v4575_v18 = vld [vmem:[#allocation6 + $0x344] ss:$24 sps:$4 sm:$0xff]  }
 0x151   :  { %2569 = vmatpush1.bf16.msra.mxu0 %v4504_v22  ;;  %v3061_v22 = vld [vmem:[#allocation9 + $0x88] sm:$0xff] }
 0x152   :  { %2741 = vmatpush1.bf16.msra.mxu1 %v4507_v23  ;;  %2570 = vmatprep.subr.bf16.mxu0 %v4512_v25  ;;  %v3063_v23 = vld [vmem:[#allocation9 + $0x98] sm:$0xff]  ;;  %v4552_v25 = vld [vmem:[#allocation6 + $0x1f0] ss:$24 sps:$4 sm:$0xff]  }
 0x153   :  { %2742 = vmatprep.subr.bf16.mxu1 %v4515_v26  ;;  %v3902_v26 = vpack.c.bf16 %v3063_v23, %v3061_v22  ;;  %v3091_v22 = vld [vmem:[#allocation9 + $0x178] sm:$0xff] }
 0x154   :  { %v4573_v23 = vld [vmem:[#allocation6 + $0x340] ss:$24 sps:$4 sm:$0xff]  }
 0x155   :  { %2571 = vmatpush1.bf16.msra.mxu0 %v4510_v27  ;;  %v3060_v27 = vld [vmem:[#allocation9 + $0x80] sm:$0xff] }
 0x156   :  { %2743 = vmatpush1.bf16.msra.mxu1 %v4513_v29  ;;  %2572 = vmatprep.subr.bf16.mxu0 %v4518_v30  ;;  %v4557_v29 = vld [vmem:[#allocation6 + $0x224] ss:$24 sps:$4 sm:$0xff]  }
 0x157   :  { %2744 = vmatprep.subr.bf16.mxu1 %v4521_v31  ;;  %v3062_v30 = vld [vmem:[#allocation9 + $0x90] sm:$0xff] }
 0x158   :  { %v3904_v31 = vpack.c.bf16 %v3062_v30, %v3060_v27  ;;  %v4578_v27 = vld [vmem:[#allocation6 + $0x374] ss:$24 sps:$4 sm:$0xff]  }
 0x159   :  { %2573 = vmatpush1.bf16.msra.mxu0 %v4516_v32  ;;  %v3065_v32 = vld [vmem:[#allocation9 + $0xa8] sm:$0xff] }
 0x15a   :  { %2745 = vmatpush1.bf16.msra.mxu1 %v4519_v34  ;;  %2757 = vmatprep.subr.bf16.mxu0 %v4524_v38  ;;  %v3067_v34 = vld [vmem:[#allocation9 + $0xb8] sm:$0xff]  ;;  %v3064_v38 = vld [vmem:[#allocation9 + $0xa0] sm:$0xff] }
 0x15b   :  { %v3906_v37 = vpack.c.bf16 %v3067_v34, %v3065_v32  ;;  %v3095_v32 = vld [vmem:[#allocation9 + $0x198] sm:$0xff]  ;;  %v4576_v34 = vld [vmem:[#allocation6 + $0x370] ss:$24 sps:$4 sm:$0xff]  }
 0x15c   :  { %2575 = vmatmul.mubr.bf16.vlgmr.msra.gmra.mrb[0].mxu0 %v4987_v39 }
 0x15d   :  { %2747 = vmatmul.mubr.bf16.vlgmr.msra.gmra.mrb[0].mxu1 %v4987_v39  ;;  %2758 = vmatpush1.bf16.msra.mxu0 %v4522_v40  ;;  %v4560_v40 = vld [vmem:[#allocation6 + $0x254] ss:$24 sps:$4 sm:$0xff]  }
 0x15e   :  { %2789 = vmatprep.mubr.bf16.mxu0 %v4959_v50  ;;  %2759 = vmatprep.subr.bf16.mxu0 %v4527_v41  ;;  %v3047_v50 = vld [vmem:[#allocation9 + $0x18] sm:$0xff]  ;;  %v3066_v41 = vld [vmem:[#allocation9 + $0xb0] sm:$0xff] }
 0x15f   :  { %v3886_v55 = vpack.c.bf16 %v3047_v50, %v3045_v53  ;;  %v3075_v53 = vld [vmem:[#allocation9 + $0xf8] sm:$0xff] }
 0x160   :  { %v4561_v50 = vld [vmem:[#allocation6 + $0x280] ss:$24 sps:$4 sm:$0xff]  }
 0x161   :  { %2760 = vmatpush1.bf16.msra.mxu0 %v4525_v42  ;;  %3887 = vmatprep.subr.bf16.mxu1 %v3886_v55  ;;  %v3908_v42 = vpack.c.bf16 %v3066_v41, %v3064_v38  ;;  %v3072_v55 = vld [vmem:[#allocation9 + $0xe0] sm:$0xff]  ;;  %v3094_v38 = vld [vmem:[#allocation9 + $0x190] sm:$0xff]  ;;  %v3099_v41 = vld [vmem:[#allocation9 + $0x1b8] sm:$0xff] }
 0x162   :  { %2761 = vmatprep.subr.bf16.mxu0 %v4530_v43  ;;  %3889 = vmatpush1.bf16.msra.mxu1 %v3888_v59  ;;  %v3069_v43 = vld [vmem:[#allocation9 + $0xc8] sm:$0xff] }
 0x163   :  { %3891 = vmatprep.subr.bf16.mxu1 %v3890_v63  ;;  %v3077_v59 = vld [vmem:[#allocation9 + $0x108] sm:$0xff]  ;;  %v3076_v63 = vld [vmem:[#allocation9 + $0x100] sm:$0xff] }
 0x165   :  { %2762 = vmatpush1.bf16.msra.mxu0 %v4528_v44  ;;  %v3071_v44 = vld [vmem:[#allocation9 + $0xd8] sm:$0xff] }
 0x166   :  { %2763 = vmatprep.subr.bf16.mxu0 %v4533_v45  ;;  %3893 = vmatpush1.bf16.msra.mxu1 %v3892_v3  ;;  %v4558_v45 = vld [vmem:[#allocation6 + $0x250] ss:$24 sps:$4 sm:$0xff]  }
 0x167   :  { %3895 = vmatprep.subr.bf16.mxu1 %v3894_v7  ;;  %v3081_v3 = vld [vmem:[#allocation9 + $0x128] sm:$0xff]  ;;  %v3080_v7 = vld [vmem:[#allocation9 + $0x120] sm:$0xff] }
 0x169   :  { %2764 = vmatpush1.bf16.msra.mxu0 %v4531_v46  ;;  %v3910_v46 = vpack.c.bf16 %v3071_v44, %v3069_v43  ;;  %v3096_v44 = vld [vmem:[#allocation9 + $0x1a0] sm:$0xff] }
 0x16a   :  { %2765 = vmatprep.subr.bf16.mxu0 %v4536_v47  ;;  %3897 = vmatpush1.bf16.msra.mxu1 %v3896_v12  ;;  %v3068_v47 = vld [vmem:[#allocation9 + $0xc0] sm:$0xff]  ;;  %v3085_v12 = vld [vmem:[#allocation9 + $0x148] sm:$0xff] }
 0x16b   :  { %3899 = vmatprep.subr.bf16.mxu1 %v3898_v16  ;;  %v3084_v16 = vld [vmem:[#allocation9 + $0x140] sm:$0xff] }
 0x16d   :  { %2766 = vmatpush1.bf16.msra.mxu0 %v4534_v48  ;;  %v4563_v48 = vld [vmem:[#allocation6 + $0x284] ss:$24 sps:$4 sm:$0xff]  }
 0x16e   :  { %2767 = vmatprep.subr.bf16.mxu0 %v4539_v49  ;;  %3901 = vmatpush1.bf16.msra.mxu1 %v3900_v21  ;;  %v3070_v49 = vld [vmem:[#allocation9 + $0xd0] sm:$0xff]  ;;  %v3089_v21 = vld [vmem:[#allocation9 + $0x168] sm:$0xff] }
 0x16f   :  { %3903 = vmatprep.subr.bf16.mxu1 %v3902_v26  ;;  %v3088_v26 = vld [vmem:[#allocation9 + $0x160] sm:$0xff] }
 0x171   :  { %2768 = vmatpush1.bf16.msra.mxu0 %v4537_v51  ;;  %v3912_v51 = vpack.c.bf16 %v3070_v49, %v3068_v47  ;;  %v3103_v49 = vld [vmem:[#allocation9 + $0x1d8] sm:$0xff] }
 0x172   :  { %2769 = vmatprep.subr.bf16.mxu0 %v4542_v52  ;;  %3905 = vmatpush1.bf16.msra.mxu1 %v3904_v31  ;;  %v3073_v52 = vld [vmem:[#allocation9 + $0xe8] sm:$0xff] }
 0x173   :  { %3907 = vmatprep.subr.bf16.mxu1 %v3906_v37  ;;  %v3093_v31 = vld [vmem:[#allocation9 + $0x188] sm:$0xff]  ;;  %v4581_v37 = vld [vmem:[#allocation6 + $0x3a4] ss:$24 sps:$4 sm:$0xff]  }
 0x175   :  { %2770 = vmatpush1.bf16.msra.mxu0 %v4540_v54  ;;  %v3914_v54 = vpack.c.bf16 %v3075_v53, %v3073_v52  ;;  %v3100_v53 = vld [vmem:[#allocation9 + $0x1c0] sm:$0xff] }
 0x176   :  { %2771 = vmatprep.subr.bf16.mxu0 %v4545_v57  ;;  %3909 = vmatpush1.bf16.msra.mxu1 %v3908_v42  ;;  %v3074_v57 = vld [vmem:[#allocation9 + $0xf0] sm:$0xff] }
 0x177   :  { %3911 = vmatprep.subr.bf16.mxu1 %v3910_v46  ;;  %v3916_v58 = vpack.c.bf16 %v3074_v57, %v3072_v55  ;;  %v4579_v42 = vld [vmem:[#allocation6 + $0x3a0] ss:$24 sps:$4 sm:$0xff]  }
 0x178   :  { %v3098_v46 = vld [vmem:[#allocation9 + $0x1b0] sm:$0xff]  ;;  %v3107_v57 = vld [vmem:[#allocation9 + $0x1f8] sm:$0xff] }
 0x179   :  { %2772 = vmatpush1.bf16.msra.mxu0 %v4543_v62  ;;  %v3918_v62 = vpack.c.bf16 %v3079_v60, %v3077_v59  ;;  %v3940_v47 = vpack.c.bf16 %v3098_v46, %v3096_v44  ;;  %v3104_v60 = vld [vmem:[#allocation9 + $0x1e0] sm:$0xff]  ;;  %v4645_v44 = vld [vmem:[#allocation6 + $0x7c0] ss:$24 sps:$4 sm:$0xff]  }
 0x17a   :  { %2773 = vmatprep.subr.bf16.mxu0 %v4548_v1  ;;  %3913 = vmatpush1.bf16.msra.mxu1 %v3912_v51  ;;  %v3078_v1 = vld [vmem:[#allocation9 + $0x110] sm:$0xff]  ;;  %v4582_v51 = vld [vmem:[#allocation6 + $0x3d0] ss:$24 sps:$4 sm:$0xff]  }
 0x17b   :  { %3915 = vmatprep.subr.bf16.mxu1 %v3914_v54  ;;  %v3920_v2 = vpack.c.bf16 %v3078_v1, %v3076_v63  ;;  %v3102_v54 = vld [vmem:[#allocation9 + $0x1d0] sm:$0xff]  ;;  %v3111_v1 = vld [vmem:[#allocation9 + $0x218] sm:$0xff]  ;;  %v4648_v46 = vld [vmem:[#allocation6 + $0x7f0] ss:$24 sps:$4 sm:$0xff]  }
 0x17c   :  { %v3944_v55 = vpack.c.bf16 %v3102_v54, %v3100_v53  ;;  %v4657_v53 = vld [vmem:[#allocation6 + $0x880] ss:$24 sps:$4 sm:$0xff]   ;;  %v4660_v54 = vld [vmem:[#allocation6 + $0x8b0] ss:$24 sps:$4 sm:$0xff]  }
 0x17d   :  { %2774 = vmatpush1.bf16.msra.mxu0 %v4546_v6  ;;  %v3922_v6 = vpack.c.bf16 %v3083_v4, %v3081_v3  ;;  %v4593_v4 = vld [vmem:[#allocation6 + $0x464] ss:$24 sps:$4 sm:$0xff]  }
 0x17e   :  { %2775 = vmatprep.subr.bf16.mxu0 %v4551_v10  ;;  %3917 = vmatpush1.bf16.msra.mxu1 %v3916_v58  ;;  %v3082_v10 = vld [vmem:[#allocation9 + $0x130] sm:$0xff] }
 0x17f   :  { %3919 = vmatprep.subr.bf16.mxu1 %v3918_v62  ;;  %v3924_v11 = vpack.c.bf16 %v3082_v10, %v3080_v7  ;;  %v4585_v58 = vld [vmem:[#allocation6 + $0x400] ss:$24 sps:$4 sm:$0xff]   ;;  %v4590_v62 = vld [vmem:[#allocation6 + $0x434] ss:$24 sps:$4 sm:$0xff]   ;;  %v4594_v7 = vld [vmem:[#allocation6 + $0x490] ss:$24 sps:$4 sm:$0xff]  }
 0x180   :  { %v4597_v10 = vld [vmem:[#allocation6 + $0x4c0] ss:$24 sps:$4 sm:$0xff]  }
 0x181   :  { %2776 = vmatpush1.bf16.msra.mxu0 %v4549_v15  ;;  %v3926_v15 = vpack.c.bf16 %v3087_v13, %v3085_v12  ;;  %v4600_v12 = vld [vmem:[#allocation6 + $0x4f0] ss:$24 sps:$4 sm:$0xff]   ;;  %v4605_v13 = vld [vmem:[#allocation6 + $0x524] ss:$24 sps:$4 sm:$0xff]  }
 0x182   :  { %2777 = vmatprep.subr.bf16.mxu0 %v4554_v19  ;;  %3921 = vmatpush1.bf16.msra.mxu1 %v3920_v2  ;;  %v3086_v19 = vld [vmem:[#allocation9 + $0x150] sm:$0xff]  ;;  %v4588_v2 = vld [vmem:[#allocation6 + $0x430] ss:$24 sps:$4 sm:$0xff]  }
 0x183   :  { %3923 = vmatprep.subr.bf16.mxu1 %v3922_v6  ;;  %v3928_v20 = vpack.c.bf16 %v3086_v19, %v3084_v16  ;;  %v4596_v6 = vld [vmem:[#allocation6 + $0x494] ss:$24 sps:$4 sm:$0xff]   ;;  %v4606_v16 = vld [vmem:[#allocation6 + $0x550] ss:$24 sps:$4 sm:$0xff]   ;;  %v4609_v19 = vld [vmem:[#allocation6 + $0x580] ss:$24 sps:$4 sm:$0xff]  }
 0x185   :  { %2778 = vmatpush1.bf16.msra.mxu0 %v4552_v25  ;;  %v3930_v25 = vpack.c.bf16 %v3091_v22, %v3089_v21  ;;  %v4612_v21 = vld [vmem:[#allocation6 + $0x5b0] ss:$24 sps:$4 sm:$0xff]   ;;  %v4617_v22 = vld [vmem:[#allocation6 + $0x5e4] ss:$24 sps:$4 sm:$0xff]  }
 0x186   :  { %2779 = vmatprep.subr.bf16.mxu0 %v4557_v29  ;;  %3925 = vmatpush1.bf16.msra.mxu1 %v3924_v11  ;;  %v3090_v29 = vld [vmem:[#allocation9 + $0x170] sm:$0xff] }
 0x187   :  { %3927 = vmatprep.subr.bf16.mxu1 %v3926_v15  ;;  %v3932_v30 = vpack.c.bf16 %v3090_v29, %v3088_v26  ;;  %v4602_v11 = vld [vmem:[#allocation6 + $0x4f4] ss:$24 sps:$4 sm:$0xff]   ;;  %v4618_v26 = vld [vmem:[#allocation6 + $0x610] ss:$24 sps:$4 sm:$0xff]   ;;  %v4621_v29 = vld [vmem:[#allocation6 + $0x640] ss:$24 sps:$4 sm:$0xff]  }
 0x188   :  { %v4608_v15 = vld [vmem:[#allocation6 + $0x554] ss:$24 sps:$4 sm:$0xff]  }
 0x189   :  { %2780 = vmatpush1.bf16.msra.mxu0 %v4555_v35  ;;  %v3934_v35 = vpack.c.bf16 %v3095_v32, %v3093_v31  ;;  %v4624_v31 = vld [vmem:[#allocation6 + $0x670] ss:$24 sps:$4 sm:$0xff]   ;;  %v4629_v32 = vld [vmem:[#allocation6 + $0x6a4] ss:$24 sps:$4 sm:$0xff]  }
 0x18a   :  { %2781 = vmatprep.subr.bf16.mxu0 %v4560_v40  ;;  %3929 = vmatpush1.bf16.msra.mxu1 %v3928_v20  ;;  %v3097_v40 = vld [vmem:[#allocation9 + $0x1a8] sm:$0xff] }
 0x18b   :  { %3931 = vmatprep.subr.bf16.mxu1 %v3930_v25  ;;  %v3938_v43 = vpack.c.bf16 %v3099_v41, %v3097_v40  ;;  %v4614_v20 = vld [vmem:[#allocation6 + $0x5b4] ss:$24 sps:$4 sm:$0xff]   ;;  %v4639_v40 = vld [vmem:[#allocation6 + $0x760] ss:$24 sps:$4 sm:$0xff]  }
 0x18c   :  { %v4620_v25 = vld [vmem:[#allocation6 + $0x614] ss:$24 sps:$4 sm:$0xff]  }
 0x18d   :  { %2782 = vmatpush1.bf16.msra.mxu0 %v4558_v45  ;;  %v4584_v45 = vld [vmem:[#allocation6 + $0x3d4] ss:$24 sps:$4 sm:$0xff]  }
 0x18e   :  { %2783 = vmatprep.subr.bf16.mxu0 %v4563_v48  ;;  %3933 = vmatpush1.bf16.msra.mxu1 %v3932_v30  ;;  %v3101_v48 = vld [vmem:[#allocation9 + $0x1c8] sm:$0xff] }
 0x18f   :  { %3935 = vmatprep.subr.bf16.mxu1 %v3934_v35  ;;  %v3942_v52 = vpack.c.bf16 %v3103_v49, %v3101_v48  ;;  %v4626_v30 = vld [vmem:[#allocation6 + $0x674] ss:$24 sps:$4 sm:$0xff]   ;;  %v4651_v48 = vld [vmem:[#allocation6 + $0x820] ss:$24 sps:$4 sm:$0xff]  }
 0x190   :  { %v4632_v35 = vld [vmem:[#allocation6 + $0x6d4] ss:$24 sps:$4 sm:$0xff]  }
 0x191   :  { %2784 = vmatpush1.bf16.msra.mxu0 %v4561_v50  ;;  %v4587_v50 = vld [vmem:[#allocation6 + $0x404] ss:$24 sps:$4 sm:$0xff]   ;;  %v4644_v41 = vld [vmem:[#allocation6 + $0x794] ss:$24 sps:$4 sm:$0xff]  }
 0x192   :  { %2785 = vmatprep.subr.bf16.mxu0 %v4566_v56  ;;  %v3105_v56 = vld [vmem:[#allocation9 + $0x1e8] sm:$0xff] }
 0x193   :  { %v3946_v59 = vpack.c.bf16 %v3107_v57, %v3105_v56  ;;  %v4656_v49 = vld [vmem:[#allocation6 + $0x854] ss:$24 sps:$4 sm:$0xff]   ;;  %v4663_v56 = vld [vmem:[#allocation6 + $0x8e0] ss:$24 sps:$4 sm:$0xff]  }
 0x194   :  { %v4668_v57 = vld [vmem:[#allocation6 + $0x914] ss:$24 sps:$4 sm:$0xff]  }
 0x195   :  { %2786 = vmatpush1.bf16.msra.mxu0 %v4564_v61  ;;  %v3106_v61 = vld [vmem:[#allocation9 + $0x1f0] sm:$0xff] }
 0x196   :  { %2787 = vmatprep.subr.bf16.mxu0 %v4569_v0  ;;  %v3948_v63 = vpack.c.bf16 %v3106_v61, %v3104_v60  ;;  %v3109_v0 = vld [vmem:[#allocation9 + $0x208] sm:$0xff]  ;;  %v4669_v60 = vld [vmem:[#allocation6 + $0x940] ss:$24 sps:$4 sm:$0xff]  }
 0x197   :  { %v3950_v3 = vpack.c.bf16 %v3111_v1, %v3109_v0  ;;  %v4674_v61 = vld [vmem:[#allocation6 + $0x974] ss:$24 sps:$4 sm:$0xff]   ;;  %v4677_v0 = vld [vmem:[#allocation6 + $0x9a4] ss:$24 sps:$4 sm:$0xff]   ;;  %v4675_v1 = vld [vmem:[#allocation6 + $0x9a0] ss:$24 sps:$4 sm:$0xff]  }
 0x199   :  { %2788 = vmatpush1.bf16.msra.mxu0 %v4567_v5  ;;  %v4591_v5 = vld [vmem:[#allocation6 + $0x460] ss:$24 sps:$4 sm:$0xff]  }
 0x19a   :  { %2800 = vmatprep.subr.bf16.mxu0 %v4572_v8  ;;  %v4599_v8 = vld [vmem:[#allocation6 + $0x4c4] ss:$24 sps:$4 sm:$0xff]  }
 0x19c   :  { %2790 = vmatmul.mubr.bf16.vlgmr.msra.gmra.mrb[4].mxu0 %v4963_v9  ;;  %v3092_v9 = vld [vmem:[#allocation9 + $0x180] sm:$0xff] }
 0x19d   :  { %2801 = vmatpush1.bf16.msra.mxu0 %v4570_v14  ;;  %2832 = vmatprep.mubr.bf16.mxu0 %v4967_v36  ;;  %v3936_v36 = vpack.c.bf16 %v3094_v38, %v3092_v9  ;;  %v4603_v14 = vld [vmem:[#allocation6 + $0x520] ss:$24 sps:$4 sm:$0xff]   ;;  %v4630_v9 = vld [vmem:[#allocation6 + $0x6d0] ss:$24 sps:$4 sm:$0xff]   ;;  %v4638_v38 = vld [vmem:[#allocation6 + $0x734] ss:$24 sps:$4 sm:$0xff]  }
 0x19e   :  { %2802 = vmatprep.subr.bf16.mxu0 %v4575_v18  ;;  %v4611_v18 = vld [vmem:[#allocation6 + $0x584] ss:$24 sps:$4 sm:$0xff]  }
 0x19f   :  { %3937 = vmatpush1.bf16.msra.mxu1 %v3936_v36  ;;  %v4641_v36 = vld [vmem:[#allocation6 + $0x764] ss:$24 sps:$4 sm:$0xff]  }
 0x1a0   :  { %3939 = vmatprep.subr.bf16.mxu1 %v3938_v43  ;;  %v4647_v43 = vld [vmem:[#allocation6 + $0x7c4] ss:$24 sps:$4 sm:$0xff]  }
 0x1a1   :  { %2803 = vmatpush1.bf16.msra.mxu0 %v4573_v23  ;;  %v4615_v23 = vld [vmem:[#allocation6 + $0x5e0] ss:$24 sps:$4 sm:$0xff]  }
 0x1a2   :  { %2804 = vmatprep.subr.bf16.mxu0 %v4578_v27  ;;  %v4623_v27 = vld [vmem:[#allocation6 + $0x644] ss:$24 sps:$4 sm:$0xff]  }
 0x1a3   :  { %3941 = vmatpush1.bf16.msra.mxu1 %v3940_v47  ;;  %v4653_v47 = vld [vmem:[#allocation6 + $0x824] ss:$24 sps:$4 sm:$0xff]  }
 0x1a4   :  { %3943 = vmatprep.subr.bf16.mxu1 %v3942_v52  ;;  %v4659_v52 = vld [vmem:[#allocation6 + $0x884] ss:$24 sps:$4 sm:$0xff]  }
 0x1a5   :  { %2805 = vmatpush1.bf16.msra.mxu0 %v4576_v34  ;;  %v4627_v34 = vld [vmem:[#allocation6 + $0x6a0] ss:$24 sps:$4 sm:$0xff]  }
 0x1a6   :  { %2806 = vmatprep.subr.bf16.mxu0 %v4581_v37  ;;  %v4635_v37 = vld [vmem:[#allocation6 + $0x704] ss:$24 sps:$4 sm:$0xff]  }
 0x1a7   :  { %3945 = vmatpush1.bf16.msra.mxu1 %v3944_v55  ;;  %v4665_v55 = vld [vmem:[#allocation6 + $0x8e4] ss:$24 sps:$4 sm:$0xff]  }
 0x1a8   :  { %3947 = vmatprep.subr.bf16.mxu1 %v3946_v59  ;;  %v4671_v59 = vld [vmem:[#allocation6 + $0x944] ss:$24 sps:$4 sm:$0xff]  }
 0x1a9   :  { %2807 = vmatpush1.bf16.msra.mxu0 %v4579_v42  ;;  %v4642_v42 = vld [vmem:[#allocation6 + $0x790] ss:$24 sps:$4 sm:$0xff]  }
 0x1aa   :  { %2808 = vmatprep.subr.bf16.mxu0 %v4584_v45  ;;  %v4650_v45 = vld [vmem:[#allocation6 + $0x7f4] ss:$24 sps:$4 sm:$0xff]  }
 0x1ab   :  { %3949 = vmatpush1.bf16.msra.mxu1 %v3948_v63  ;;  %v3002_v63 = vlaneseq }
 0x1ac   :  { %3951 = vmatprep.subr.bf16.mxu1 %v3950_v3  ;;  %v4680_v3 = vld [vmem:[#allocation6 + $0x9d4] ss:$24 sps:$4 sm:$0xff]  }
 0x1ad   :  { %2809 = vmatpush1.bf16.msra.mxu0 %v4582_v51  ;;  %v4654_v51 = vld [vmem:[#allocation6 + $0x850] ss:$24 sps:$4 sm:$0xff]  }
 0x1ae   :  { %2810 = vmatprep.subr.bf16.mxu0 %v4587_v50  ;;  %v4662_v50 = vld [vmem:[#allocation6 + $0x8b4] ss:$24 sps:$4 sm:$0xff]  }
 0x1b1   :  { %2811 = vmatpush1.bf16.msra.mxu0 %v4585_v58  ;;  %v4666_v58 = vld [vmem:[#allocation6 + $0x910] ss:$24 sps:$4 sm:$0xff]  }
 0x1b2   :  { %2812 = vmatprep.subr.bf16.mxu0 %v4590_v62  ;;  %v4672_v62 = vld [vmem:[#allocation6 + $0x970] ss:$24 sps:$4 sm:$0xff]  }
 0x1b5   :  { %2813 = vmatpush1.bf16.msra.mxu0 %v4588_v2  ;;  %v4998_v2 = vshrl.u32 %v3002_v63, 7  ;;  %v3129_v63 = vld [vmem:[#allocation9 + $0x2a8] sm:$0xff] }
 0x1b6   :  { %2814 = vmatprep.subr.bf16.mxu0 %v4593_v4  ;;  %v4678_v4 = vld [vmem:[#allocation6 + $0x9d0] ss:$24 sps:$4 sm:$0xff]  }
 0x1b9   :  { %2815 = vmatpush1.bf16.msra.mxu0 %v4591_v5  ;;  %v5001_v5 = vld [vmem:[#allocation8] sm:$0x3f] }
 0x1ba   :  { %2816 = vmatprep.subr.bf16.mxu0 %v4596_v6  ;;  %v4683_v6 = vld [vmem:[#allocation6 + $0xa04] ss:$24 sps:$4 sm:$0xff]  }
 0x1bd   :  { %2817 = vmatpush1.bf16.msra.mxu0 %v4594_v7 }
 0x1be   :  { %2818 = vmatprep.subr.bf16.mxu0 %v4599_v8  ;;  %v4681_v8 = vld [vmem:[#allocation6 + $0xa00] ss:$24 sps:$4 sm:$0xff]  }
 0x1c1   :  { %2819 = vmatpush1.bf16.msra.mxu0 %v4597_v10 }
 0x1c2   :  { %2820 = vmatprep.subr.bf16.mxu0 %v4602_v11  ;;  %v4686_v11 = vld [vmem:[#allocation6 + $0xa34] ss:$24 sps:$4 sm:$0xff]  }
 0x1c5   :  { %2821 = vmatpush1.bf16.msra.mxu0 %v4600_v12  ;;  %v3108_v12 = vld [vmem:[#allocation9 + $0x200] sm:$0xff] }
 0x1c6   :  { %2822 = vmatprep.subr.bf16.mxu0 %v4605_v13  ;;  %v3110_v13 = vld [vmem:[#allocation9 + $0x210] sm:$0xff] }
 0x1c9   :  { %2823 = vmatpush1.bf16.msra.mxu0 %v4603_v14 }
 0x1ca   :  { %2824 = vmatprep.subr.bf16.mxu0 %v4608_v15 }
 0x1cd   :  { %2825 = vmatpush1.bf16.msra.mxu0 %v4606_v16  ;;  %v3113_v16 = vld [vmem:[#allocation9 + $0x228] sm:$0xff] }
 0x1ce   :  { %2826 = vmatprep.subr.bf16.mxu0 %v4611_v18  ;;  %v3115_v18 = vld [vmem:[#allocation9 + $0x238] sm:$0xff] }
 0x1d1   :  { %2827 = vmatpush1.bf16.msra.mxu0 %v4609_v19 }
 0x1d2   :  { %2828 = vmatprep.subr.bf16.mxu0 %v4614_v20 }
 0x1d5   :  { %2829 = vmatpush1.bf16.msra.mxu0 %v4612_v21  ;;  %v3016_v21 = vsub.s32 3, %v4998_v2 }
 0x1d6   :  { %2830 = vmatprep.subr.bf16.mxu0 %v4617_v22 }
 0x1d9   :  { %2831 = vmatpush1.bf16.msra.mxu0 %v4615_v23 }
 0x1da   :  { %2843 = vmatprep.subr.bf16.mxu0 %v4620_v25 }
 0x1dc   :  { %2833 = vmatmul.mubr.bf16.vlgmr.msra.gmra.mrb[4].mxu0 %v4971_v17  ;;  %v4633_v17 = vld [vmem:[#allocation6 + $0x700] ss:$24 sps:$4 sm:$0xff]  }
 0x1dd   :  { %2844 = vmatpush1.bf16.msra.mxu0 %v4618_v26  ;;  %2875 = vmatprep.mubr.bf16.mxu0 %v4975_v24  ;;  %v4636_v24 = vld [vmem:[#allocation6 + $0x730] ss:$24 sps:$4 sm:$0xff]  }
 0x1de   :  { %2845 = vmatprep.subr.bf16.mxu0 %v4623_v27  ;;  %v4684_v26 = vld [vmem:[#allocation6 + $0xa30] ss:$24 sps:$4 sm:$0xff]   ;;  %v3952_v27 = vpack.c.bf16 %v3110_v13, %v3108_v12  ;;  %v4699_v12 = vld [vmem:[#allocation6 + $0xb20] ss:$24 sps:$4 sm:$0xff]  }
 0x1e1   :  { %2846 = vmatpush1.bf16.msra.mxu0 %v4621_v29 }
 0x1e2   :  { %2847 = vmatprep.subr.bf16.mxu0 %v4626_v30 }
 0x1e5   :  { %2848 = vmatpush1.bf16.msra.mxu0 %v4624_v31 }
 0x1e6   :  { %2849 = vmatprep.subr.bf16.mxu0 %v4629_v32  ;;  %v3954_v32 = vpack.c.bf16 %v3115_v18, %v3113_v16  ;;  %v4704_v16 = vld [vmem:[#allocation6 + $0xb54] ss:$24 sps:$4 sm:$0xff]  }
 0x1e7   :  { %v3132_v18 = vld [vmem:[#allocation9 + $0x2c0] sm:$0xff] }
 0x1e9   :  { %2850 = vmatpush1.bf16.msra.mxu0 %v4627_v34  ;;  %v3112_v34 = vld [vmem:[#allocation9 + $0x220] sm:$0xff] }
 0x1ea   :  { %2851 = vmatprep.subr.bf16.mxu0 %v4632_v35  ;;  %v3114_v35 = vld [vmem:[#allocation9 + $0x230] sm:$0xff] }
 0x1ed   :  { %2852 = vmatpush1.bf16.msra.mxu0 %v4630_v9 }
 0x1ee   :  { %2853 = vmatprep.subr.bf16.mxu0 %v4635_v37  ;;  %v4689_v37 = vld [vmem:[#allocation6 + $0xa64] ss:$24 sps:$4 sm:$0xff]  }
 0x1f1   :  { %2854 = vmatpush1.bf16.msra.mxu0 %v4633_v17  ;;  %v3117_v17 = vld [vmem:[#allocation9 + $0x248] sm:$0xff] }
 0x1f2   :  { %2855 = vmatprep.subr.bf16.mxu0 %v4638_v38  ;;  %v3119_v38 = vld [vmem:[#allocation9 + $0x258] sm:$0xff] }
 0x1f5   :  { %2856 = vmatpush1.bf16.msra.mxu0 %v4636_v24  ;;  %v5018_v24 = vrot.slane %v5001_v5, %v3016_v21  ;;  %v3139_v21 = vld [vmem:[#allocation9 + $0x2f8] sm:$0xff] }
 0x1f6   :  { %2857 = vmatprep.subr.bf16.mxu0 %v4641_v36  ;;  %v4687_v36 = vld [vmem:[#allocation6 + $0xa60] ss:$24 sps:$4 sm:$0xff]  }
 0x1f9   :  { %2858 = vmatpush1.bf16.msra.mxu0 %v4639_v40  ;;  %v3956_v40 = vpack.c.bf16 %v3114_v35, %v3112_v34  ;;  %v3143_v34 = vld [vmem:[#allocation9 + $0x318] sm:$0xff] }
 0x1fa   :  { %2859 = vmatprep.subr.bf16.mxu0 %v4644_v41  ;;  %v4705_v35 = vld [vmem:[#allocation6 + $0xb80] ss:$24 sps:$4 sm:$0xff]  }
 0x1fd   :  { %2860 = vmatpush1.bf16.msra.mxu0 %v4642_v42  ;;  %v3958_v42 = vpack.c.bf16 %v3119_v38, %v3117_v17  ;;  %v4710_v17 = vld [vmem:[#allocation6 + $0xbb4] ss:$24 sps:$4 sm:$0xff]  }
 0x1fe   :  { %2861 = vmatprep.subr.bf16.mxu0 %v4647_v43  ;;  %v3116_v43 = vld [vmem:[#allocation9 + $0x240] sm:$0xff] }
 0x1ff   :  { %v3140_v38 = vld [vmem:[#allocation9 + $0x300] sm:$0xff] }
 0x201   :  { %2862 = vmatpush1.bf16.msra.mxu0 %v4645_v44  ;;  %v3118_v44 = vld [vmem:[#allocation9 + $0x250] sm:$0xff] }
 0x202   :  { %2863 = vmatprep.subr.bf16.mxu0 %v4650_v45  ;;  %v4692_v45 = vld [vmem:[#allocation6 + $0xa94] ss:$24 sps:$4 sm:$0xff]  }
 0x205   :  { %2864 = vmatpush1.bf16.msra.mxu0 %v4648_v46  ;;  %v3121_v46 = vld [vmem:[#allocation9 + $0x268] sm:$0xff] }
 0x206   :  { %2865 = vmatprep.subr.bf16.mxu0 %v4653_v47  ;;  %v3123_v47 = vld [vmem:[#allocation9 + $0x278] sm:$0xff] }
 0x209   :  { %2866 = vmatpush1.bf16.msra.mxu0 %v4651_v48 }
 0x20a   :  { %2867 = vmatprep.subr.bf16.mxu0 %v4656_v49  ;;  %v4690_v49 = vld [vmem:[#allocation6 + $0xa90] ss:$24 sps:$4 sm:$0xff]  }
 0x20d   :  { %2868 = vmatpush1.bf16.msra.mxu0 %v4654_v51  ;;  %v3960_v51 = vpack.c.bf16 %v3118_v44, %v3116_v43 }
 0x20e   :  { %2869 = vmatprep.subr.bf16.mxu0 %v4659_v52  ;;  %v3962_v52 = vpack.c.bf16 %v3123_v47, %v3121_v46  ;;  %v3144_v46 = vld [vmem:[#allocation9 + $0x320] sm:$0xff]  ;;  %v3146_v47 = vld [vmem:[#allocation9 + $0x330] sm:$0xff] }
 0x211   :  { %2870 = vmatpush1.bf16.msra.mxu0 %v4657_v53  ;;  %v4695_v53 = vld [vmem:[#allocation6 + $0xac4] ss:$24 sps:$4 sm:$0xff]  }
 0x212   :  { %2871 = vmatprep.subr.bf16.mxu0 %v4662_v50  ;;  %v3120_v50 = vld [vmem:[#allocation9 + $0x260] sm:$0xff] }
 0x215   :  { %2872 = vmatpush1.bf16.msra.mxu0 %v4660_v54  ;;  %v3122_v54 = vld [vmem:[#allocation9 + $0x270] sm:$0xff] }
 0x216   :  { %2873 = vmatprep.subr.bf16.mxu0 %v4665_v55  ;;  %v3125_v55 = vld [vmem:[#allocation9 + $0x288] sm:$0xff] }
 0x219   :  { %2874 = vmatpush1.bf16.msra.mxu0 %v4663_v56  ;;  %v3127_v56 = vld [vmem:[#allocation9 + $0x298] sm:$0xff] }
 0x21a   :  { %2886 = vmatprep.subr.bf16.mxu0 %v4668_v57  ;;  %v4693_v57 = vld [vmem:[#allocation6 + $0xac0] ss:$24 sps:$4 sm:$0xff]  }
 0x21c   :  { %2876 = vmatmul.mubr.bf16.vlgmr.msra.gmra.mrb[4].mxu0 %v4979_v28  ;;  %v3008_v28 = vsub.s32 1, %v4998_v2 }
 0x21d   :  { %2887 = vmatpush1.bf16.msra.mxu0 %v4666_v58  ;;  %2918 = vmatprep.mubr.bf16.mxu0 %v4981_v33  ;;  %v3004_v33 = vsub.s32 0, %v4998_v2  ;;  %v3964_v58 = vpack.c.bf16 %v3122_v54, %v3120_v50  ;;  %v3148_v50 = vld [vmem:[#allocation9 + $0x340] sm:$0xff]  ;;  %v3150_v54 = vld [vmem:[#allocation9 + $0x350] sm:$0xff] }
 0x21e   :  { %2888 = vmatprep.subr.bf16.mxu0 %v4671_v59  ;;  %v3009_v7 = vrot.slane %v5001_v5, %v3008_v28  ;;  %v3966_v59 = vpack.c.bf16 %v3127_v56, %v3125_v55  ;;  %v3153_v55 = vld [vmem:[#allocation9 + $0x368] sm:$0xff]  ;;  %v3155_v56 = vld [vmem:[#allocation9 + $0x378] sm:$0xff] }
 0x21f   :  { %v3005_v10 = vrot.slane %v5001_v5, %v3004_v33 }
 0x221   :  { %2889 = vmatpush1.bf16.msra.mxu0 %v4669_v60  ;;  %v4698_v60 = vld [vmem:[#allocation6 + $0xaf4] ss:$24 sps:$4 sm:$0xff]  }
 0x222   :  { %2890 = vmatprep.subr.bf16.mxu0 %v4674_v61  ;;  %v3124_v61 = vld [vmem:[#allocation9 + $0x280] sm:$0xff] }
 0x225   :  { %2891 = vmatpush1.bf16.msra.mxu0 %v4672_v62  ;;  %v3126_v62 = vld [vmem:[#allocation9 + $0x290] sm:$0xff] }
 0x226   :  { %2892 = vmatprep.subr.bf16.mxu0 %v4677_v0  ;;  %v3131_v0 = vld [vmem:[#allocation9 + $0x2b8] sm:$0xff] }
 0x229   :  { %2893 = vmatpush1.bf16.msra.mxu0 %v4675_v1  ;;  %v4696_v1 = vld [vmem:[#allocation6 + $0xaf0] ss:$24 sps:$4 sm:$0xff]  }
 0x22a   :  { %2894 = vmatprep.subr.bf16.mxu0 %v4680_v3  ;;  %v3968_v3 = vpack.c.bf16 %v3126_v62, %v3124_v61  ;;  %v3157_v61 = vld [vmem:[#allocation9 + $0x388] sm:$0xff]  ;;  %v3159_v62 = vld [vmem:[#allocation9 + $0x398] sm:$0xff] }
 0x22d   :  { %2895 = vmatpush1.bf16.msra.mxu0 %v4678_v4  ;;  %v3970_v4 = vpack.c.bf16 %v3131_v0, %v3129_v63  ;;  %v3998_v0 = vpack.c.bf16 %v3159_v62, %v3157_v61  ;;  %v3195_v61 = vld [vmem:[#allocation9 + $0x4b8] sm:$0xff] }
 0x22e   :  { %2896 = vmatprep.subr.bf16.mxu0 %v4683_v6  ;;  %v4701_v6 = vld [vmem:[#allocation6 + $0xb24] ss:$24 sps:$4 sm:$0xff]  }
 0x22f   :  { %v2576_v14 = vpop.f32.mrb[0].mxu0 }
 0x230   :  { %v5010_v15 = vpop.f32.mrb[0].mxu1  ;;  %v2578_v19 = vpop.f32.mrb[1].mxu0  ;;  %v3032_v29 = vadd.f32 %v3005_v10, %v2576_v14 }
 0x231   :  { %v2750_v20 = vpop.f32.mrb[1].mxu1  ;;  %v3033_v22 = vadd.f32 %v3009_v7, %v2578_v19  ;;  %v2580_v23 = vpop.f32.mrb[2].mxu0  ;;  %2897 = vmatpush1.bf16.msra.mxu0 %v4681_v8  ;;  %v3130_v8 = vld [vmem:[#allocation9 + $0x2b0] sm:$0xff] }
 0x232   :  { %v5013_v25 = vpop.f32.mrb[2].mxu1  ;;  %v2582_v30 = vpop.f32.mrb[3].mxu0  ;;  %2898 = vmatprep.subr.bf16.mxu0 %v4686_v11  ;;  %v3038_v41 = vadd.f32 %v3005_v10, %v2580_v23  ;;  %v3035_v48 = vadd.f32 %v5018_v24, %v2750_v20  ;;  %v3133_v10 = vld [vmem:[#allocation9 + $0x2c8] sm:$0xff]  ;;  %v3135_v11 = vld [vmem:[#allocation9 + $0x2d8] sm:$0xff]  ;;  %v3134_v19 = vld [vmem:[#allocation9 + $0x2d0] sm:$0xff] }
 0x233   :  { %v5015_v31 = vpop.f32.mrb[3].mxu1  ;;  %v3039_v9 = vadd.f32 %v3009_v7, %v2582_v30  ;;  %3312 = vmatprep.mubr.f32.mxu1 %v3033_v22  ;;  %v3128_v7 = vld [vmem:[#allocation9 + $0x2a0] sm:$0xff]  ;;  %v3974_v14 = vpack.c.bf16 %v3135_v11, %v3133_v10  ;;  %v3137_v20 = vld [vmem:[#allocation9 + $0x2e8] sm:$0xff]  ;;  %v3976_v23 = vpack.c.bf16 %v3134_v19, %v3132_v18  ;;  %v3138_v30 = vld [vmem:[#allocation9 + $0x2f0] sm:$0xff] }
 0x234   :  { %3313 = vmatmul.mubr.f32.vlgmr.msra.gmra.mrb[4].mxu1 %v3032_v29  ;;  %v3972_v13 = vpack.c.bf16 %v3130_v8, %v3128_v7  ;;  %v4702_v22 = vld [vmem:[#allocation6 + $0xb50] ss:$24 sps:$4 sm:$0xff]   ;;  %v3162_v11 = vld [vmem:[#allocation9 + $0x3b0] sm:$0xff] }
 0x235   :  { %3953 = vmatpush1.bf16.msra.mxu1 %v3952_v27  ;;  %2899 = vmatpush1.bf16.msra.mxu0 %v4684_v26  ;;  %v3978_v26 = vpack.c.bf16 %v3139_v21, %v3137_v20  ;;  %v4707_v27 = vld [vmem:[#allocation6 + $0xb84] ss:$24 sps:$4 sm:$0xff]   ;;  %v3169_v19 = vld [vmem:[#allocation9 + $0x3e8] sm:$0xff] }
 0x236   :  { %3318 = vmatprep.mubr.f32.mxu1 %v3039_v9  ;;  %3955 = vmatprep.subr.bf16.mxu1 %v3954_v32  ;;  %v3136_v29 = vld [vmem:[#allocation9 + $0x2e0] sm:$0xff]  ;;  %v3141_v32 = vld [vmem:[#allocation9 + $0x308] sm:$0xff]  ;;  %v3166_v18 = vld [vmem:[#allocation9 + $0x3d0] sm:$0xff] }
 0x237   :  { %2900 = vmatprep.subr.bf16.mxu0 %v4689_v37  ;;  %v3980_v9 = vpack.c.bf16 %v3138_v30, %v3136_v29  ;;  %v3982_v37 = vpack.c.bf16 %v3143_v34, %v3141_v32  ;;  %v3160_v10 = vld [vmem:[#allocation9 + $0x3a0] sm:$0xff]  ;;  %v3171_v20 = vld [vmem:[#allocation9 + $0x3f8] sm:$0xff]  ;;  %v3173_v29 = vld [vmem:[#allocation9 + $0x408] sm:$0xff] }
 0x238   :  { %3319 = vmatmul.mubr.f32.gmra.mrb[6].mxu1 %v3038_v41  ;;  %v3147_v41 = vld [vmem:[#allocation9 + $0x338] sm:$0xff] }
 0x239   :  { %3957 = vmatpush1.bf16.msra.mxu1 %v3956_v40  ;;  %2901 = vmatpush1.bf16.msra.mxu0 %v4687_v36  ;;  %v3142_v36 = vld [vmem:[#allocation9 + $0x310] sm:$0xff]  ;;  %v3145_v40 = vld [vmem:[#allocation9 + $0x328] sm:$0xff]  ;;  %v3175_v30 = vld [vmem:[#allocation9 + $0x418] sm:$0xff] }
 0x23a   :  { %3389 = vmatprep.mubr.f32.mxu1 %v3035_v48  ;;  %3959 = vmatprep.subr.bf16.mxu1 %v3958_v42  ;;  %v4708_v42 = vld [vmem:[#allocation6 + $0xbb0] ss:$24 sps:$4 sm:$0xff]   ;;  %v3984_v43 = vpack.c.bf16 %v3142_v36, %v3140_v38  ;;  %v3986_v44 = vpack.c.bf16 %v3147_v41, %v3145_v40  ;;  %v3179_v38 = vld [vmem:[#allocation9 + $0x438] sm:$0xff] }
 0x23b   :  { %2902 = vmatprep.subr.bf16.mxu0 %v4692_v45  ;;  %v4713_v45 = vld [vmem:[#allocation6 + $0xbe4] ss:$24 sps:$4 sm:$0xff]   ;;  %v3149_v48 = vld [vmem:[#allocation9 + $0x348] sm:$0xff] }
 0x23d   :  { %3961 = vmatpush1.bf16.msra.mxu1 %v3960_v51  ;;  %2903 = vmatpush1.bf16.msra.mxu0 %v4690_v49  ;;  %v3151_v49 = vld [vmem:[#allocation9 + $0x358] sm:$0xff] }
 0x23e   :  { %3963 = vmatprep.subr.bf16.mxu1 %v3962_v52  ;;  %2904 = vmatprep.subr.bf16.mxu0 %v4695_v53  ;;  %v4711_v51 = vld [vmem:[#allocation6 + $0xbe0] ss:$24 sps:$4 sm:$0xff]   ;;  %v3988_v52 = vpack.c.bf16 %v3146_v47, %v3144_v46  ;;  %v3990_v53 = vpack.c.bf16 %v3151_v49, %v3149_v48 }
 0x23f   :  { %v3183_v46 = vld [vmem:[#allocation9 + $0x458] sm:$0xff] }
 0x241   :  { %3965 = vmatpush1.bf16.msra.mxu1 %v3964_v58  ;;  %2905 = vmatpush1.bf16.msra.mxu0 %v4693_v57  ;;  %v3992_v57 = vpack.c.bf16 %v3150_v54, %v3148_v50  ;;  %v3994_v58 = vpack.c.bf16 %v3155_v56, %v3153_v55  ;;  %v3189_v55 = vld [vmem:[#allocation9 + $0x488] sm:$0xff]  ;;  %v3191_v56 = vld [vmem:[#allocation9 + $0x498] sm:$0xff] }
 0x242   :  { %3967 = vmatprep.subr.bf16.mxu1 %v3966_v59  ;;  %2906 = vmatprep.subr.bf16.mxu0 %v4698_v60  ;;  %v3152_v59 = vld [vmem:[#allocation9 + $0x360] sm:$0xff]  ;;  %v3154_v60 = vld [vmem:[#allocation9 + $0x370] sm:$0xff] }
 0x243   :  { %v3996_v63 = vpack.c.bf16 %v3154_v60, %v3152_v59  ;;  %v3190_v59 = vld [vmem:[#allocation9 + $0x490] sm:$0xff]  ;;  %v3193_v60 = vld [vmem:[#allocation9 + $0x4a8] sm:$0xff] }
 0x245   :  { %3969 = vmatpush1.bf16.msra.mxu1 %v3968_v3  ;;  %2907 = vmatpush1.bf16.msra.mxu0 %v4696_v1  ;;  %v3156_v1 = vld [vmem:[#allocation9 + $0x380] sm:$0xff]  ;;  %v3158_v3 = vld [vmem:[#allocation9 + $0x390] sm:$0xff] }
 0x246   :  { %3971 = vmatprep.subr.bf16.mxu1 %v3970_v4  ;;  %2908 = vmatprep.subr.bf16.mxu0 %v4701_v6  ;;  %v3161_v4 = vld [vmem:[#allocation9 + $0x3a8] sm:$0xff]  ;;  %v3163_v6 = vld [vmem:[#allocation9 + $0x3b8] sm:$0xff]  ;;  %v4000_v7 = vpack.c.bf16 %v3158_v3, %v3156_v1  ;;  %v3194_v1 = vld [vmem:[#allocation9 + $0x4b0] sm:$0xff] }
 0x247   :  { %v4002_v8 = vpack.c.bf16 %v3163_v6, %v3161_v4  ;;  %v3197_v3 = vld [vmem:[#allocation9 + $0x4c8] sm:$0xff]  ;;  %v3199_v4 = vld [vmem:[#allocation9 + $0x4d8] sm:$0xff] }
 0x249   :  { %3973 = vmatpush1.bf16.msra.mxu1 %v3972_v13  ;;  %2909 = vmatpush1.bf16.msra.mxu0 %v4699_v12  ;;  %v3165_v12 = vld [vmem:[#allocation9 + $0x3c8] sm:$0xff]  ;;  %v3167_v13 = vld [vmem:[#allocation9 + $0x3d8] sm:$0xff] }
 0x24a   :  { %3975 = vmatprep.subr.bf16.mxu1 %v3974_v14  ;;  %2910 = vmatprep.subr.bf16.mxu0 %v4704_v16  ;;  %v4004_v14 = vpack.c.bf16 %v3162_v11, %v3160_v10  ;;  %v3164_v16 = vld [vmem:[#allocation9 + $0x3c0] sm:$0xff]  ;;  %v3198_v10 = vld [vmem:[#allocation9 + $0x4d0] sm:$0xff]  ;;  %v3201_v11 = vld [vmem:[#allocation9 + $0x4e8] sm:$0xff] }
 0x24b   :  { %v4008_v21 = vpack.c.bf16 %v3166_v18, %v3164_v16  ;;  %v3202_v16 = vld [vmem:[#allocation9 + $0x4f0] sm:$0xff]  ;;  %v3205_v18 = vld [vmem:[#allocation9 + $0x508] sm:$0xff] }
 0x24d   :  { %3977 = vmatpush1.bf16.msra.mxu1 %v3976_v23  ;;  %2911 = vmatpush1.bf16.msra.mxu0 %v4702_v22  ;;  %v3012_v22 = vsub.s32 2, %v4998_v2  ;;  %v4010_v23 = vpack.c.bf16 %v3171_v20, %v3169_v19  ;;  %v3207_v19 = vld [vmem:[#allocation9 + $0x518] sm:$0xff] }
 0x24e   :  { %3979 = vmatprep.subr.bf16.mxu1 %v3978_v26  ;;  %2912 = vmatprep.subr.bf16.mxu0 %v4707_v27  ;;  %v3168_v26 = vld [vmem:[#allocation9 + $0x3e0] sm:$0xff]  ;;  %v3170_v27 = vld [vmem:[#allocation9 + $0x3f0] sm:$0xff] }
 0x24f   :  { %v4012_v32 = vpack.c.bf16 %v3170_v27, %v3168_v26  ;;  %v3013_v34 = vrot.slane %v5001_v5, %v3012_v22  ;;  %v3204_v22 = vld [vmem:[#allocation9 + $0x500] sm:$0xff]  ;;  %v3209_v26 = vld [vmem:[#allocation9 + $0x528] sm:$0xff]  ;;  %v3211_v27 = vld [vmem:[#allocation9 + $0x538] sm:$0xff] }
 0x251   :  { %3981 = vmatpush1.bf16.msra.mxu1 %v3980_v9  ;;  %2913 = vmatpush1.bf16.msra.mxu0 %v4705_v35  ;;  %v4014_v35 = vpack.c.bf16 %v3175_v30, %v3173_v29  ;;  %v3172_v9 = vld [vmem:[#allocation9 + $0x400] sm:$0xff]  ;;  %v3034_v40 = vadd.f32 %v3013_v34, %v5010_v15  ;;  %v3040_v48 = vadd.f32 %v3013_v34, %v5013_v25  ;;  %v3185_v15 = vld [vmem:[#allocation9 + $0x468] sm:$0xff]  ;;  %v3210_v34 = vld [vmem:[#allocation9 + $0x530] sm:$0xff] }
 0x252   :  { %3983 = vmatprep.subr.bf16.mxu1 %v3982_v37  ;;  %2914 = vmatprep.subr.bf16.mxu0 %v4710_v17  ;;  %v3174_v37 = vld [vmem:[#allocation9 + $0x410] sm:$0xff]  ;;  %v3177_v17 = vld [vmem:[#allocation9 + $0x428] sm:$0xff]  ;;  %v3188_v25 = vld [vmem:[#allocation9 + $0x480] sm:$0xff]  ;;  %v4050_v30 = vpack.c.bf16 %v3211_v27, %v3209_v26 }
 0x253   :  { %v4016_v36 = vpack.c.bf16 %v3174_v37, %v3172_v9  ;;  %v4018_v41 = vpack.c.bf16 %v3179_v38, %v3177_v17  ;;  %v4032_v62 = vpack.c.bf16 %v3190_v59, %v3188_v25  ;;  %v3215_v9 = vld [vmem:[#allocation9 + $0x558] sm:$0xff]  ;;  %v3212_v38 = vld [vmem:[#allocation9 + $0x540] sm:$0xff]  ;;  %v3230_v59 = vld [vmem:[#allocation9 + $0x5d0] sm:$0xff] }
 0x254   :  { %v3228_v25 = vld [vmem:[#allocation9 + $0x5c0] sm:$0xff] }
 0x255   :  { %3985 = vmatpush1.bf16.msra.mxu1 %v3984_v43  ;;  %2915 = vmatpush1.bf16.msra.mxu0 %v4708_v42  ;;  %v3176_v42 = vld [vmem:[#allocation9 + $0x420] sm:$0xff]  ;;  %v3178_v43 = vld [vmem:[#allocation9 + $0x430] sm:$0xff] }
 0x256   :  { %3987 = vmatprep.subr.bf16.mxu1 %v3986_v44  ;;  %2916 = vmatprep.subr.bf16.mxu0 %v4713_v45  ;;  %v3041_v44 = vadd.f32 %v5018_v24, %v5015_v31  ;;  %v3181_v45 = vld [vmem:[#allocation9 + $0x448] sm:$0xff]  ;;  %v4020_v47 = vpack.c.bf16 %v3178_v43, %v3176_v42  ;;  %v3184_v31 = vld [vmem:[#allocation9 + $0x460] sm:$0xff]  ;;  %v3186_v24 = vld [vmem:[#allocation9 + $0x470] sm:$0xff] }
 0x257   :  { %v4022_v49 = vpack.c.bf16 %v3183_v46, %v3181_v45  ;;  %v3218_v45 = vld [vmem:[#allocation9 + $0x570] sm:$0xff]  ;;  %v3221_v46 = vld [vmem:[#allocation9 + $0x588] sm:$0xff] }
 0x259   :  { %3989 = vmatpush1.bf16.msra.mxu1 %v3988_v52  ;;  %2917 = vmatpush1.bf16.msra.mxu0 %v4711_v51  ;;  %v3180_v51 = vld [vmem:[#allocation9 + $0x440] sm:$0xff]  ;;  %v3182_v52 = vld [vmem:[#allocation9 + $0x450] sm:$0xff] }
 0x25a   :  { %3991 = vmatprep.subr.bf16.mxu1 %v3990_v53  ;;  %v3187_v53 = vld [vmem:[#allocation9 + $0x478] sm:$0xff]  ;;  %v4024_v50 = vpack.c.bf16 %v3182_v52, %v3180_v51  ;;  %v3220_v51 = vld [vmem:[#allocation9 + $0x580] sm:$0xff]  ;;  %v3222_v52 = vld [vmem:[#allocation9 + $0x590] sm:$0xff] }
 0x25b   :  { %v4026_v54 = vpack.c.bf16 %v3187_v53, %v3185_v15  ;;  %v3225_v15 = vld [vmem:[#allocation9 + $0x5a8] sm:$0xff]  ;;  %v3227_v53 = vld [vmem:[#allocation9 + $0x5b8] sm:$0xff] }
 0x25c   :  { %2919 = vmatmul.mubr.bf16.vlgmr.msra.gmra.mrb[4].mxu0 %v4987_v39  ;;  %v4006_v39 = vpack.c.bf16 %v3167_v13, %v3165_v12  ;;  %v3203_v12 = vld [vmem:[#allocation9 + $0x4f8] sm:$0xff] }
 0x25d   :  { %3993 = vmatpush1.bf16.msra.mxu1 %v3992_v57  ;;  %v4028_v57 = vpack.c.bf16 %v3186_v24, %v3184_v31  ;;  %v3224_v31 = vld [vmem:[#allocation9 + $0x5a0] sm:$0xff]  ;;  %v3226_v24 = vld [vmem:[#allocation9 + $0x5b0] sm:$0xff] }
 0x25e   :  { %3995 = vmatprep.subr.bf16.mxu1 %v3994_v58  ;;  %v4030_v58 = vpack.c.bf16 %v3191_v56, %v3189_v55  ;;  %v3229_v55 = vld [vmem:[#allocation9 + $0x5c8] sm:$0xff]  ;;  %v3231_v56 = vld [vmem:[#allocation9 + $0x5d8] sm:$0xff] }
 0x261   :  { %3997 = vmatpush1.bf16.msra.mxu1 %v3996_v63  ;;  %v4034_v63 = vpack.c.bf16 %v3195_v61, %v3193_v60  ;;  %v4072_v60 = vpack.c.bf16 %v3230_v59, %v3228_v25  ;;  %v3233_v61 = vld [vmem:[#allocation9 + $0x5e8] sm:$0xff] }
 0x262   :  { %3999 = vmatprep.subr.bf16.mxu1 %v3998_v0  ;;  %v3192_v0 = vld [vmem:[#allocation9 + $0x4a0] sm:$0xff] }
 0x263   :  { %v4036_v6 = vpack.c.bf16 %v3194_v1, %v3192_v0  ;;  %v3232_v0 = vld [vmem:[#allocation9 + $0x5e0] sm:$0xff]  ;;  %v3234_v1 = vld [vmem:[#allocation9 + $0x5f0] sm:$0xff] }
 0x265   :  { %4001 = vmatpush1.bf16.msra.mxu1 %v4000_v7  ;;  %v4038_v7 = vpack.c.bf16 %v3199_v4, %v3197_v3  ;;  %v4076_v3 = vpack.c.bf16 %v3234_v1, %v3232_v0  ;;  %v3024_v4 = vsub.s32 5, %v4998_v2 }
 0x266   :  { %4003 = vmatprep.subr.bf16.mxu1 %v4002_v8  ;;  %v3196_v8 = vld [vmem:[#allocation9 + $0x4c0] sm:$0xff] }
 0x267   :  { %v4040_v13 = vpack.c.bf16 %v3198_v10, %v3196_v8 }
 0x269   :  { %4005 = vmatpush1.bf16.msra.mxu1 %v4004_v14  ;;  %v4042_v14 = vpack.c.bf16 %v3203_v12, %v3201_v11 }
 0x26a   :  { %4007 = vmatprep.subr.bf16.mxu1 %v4006_v39  ;;  %v3200_v39 = vld [vmem:[#allocation9 + $0x4e0] sm:$0xff] }
 0x26b   :  { %v4044_v20 = vpack.c.bf16 %v3202_v16, %v3200_v39 }
 0x26d   :  { %4009 = vmatpush1.bf16.msra.mxu1 %v4008_v21  ;;  %v4046_v21 = vpack.c.bf16 %v3207_v19, %v3205_v18  ;;  %v3236_v19 = vld [vmem:[#allocation11] sm:$0x3] }
 0x26e   :  { %4011 = vmatprep.subr.bf16.mxu1 %v4010_v23  ;;  %v3206_v23 = vld [vmem:[#allocation9 + $0x510] sm:$0xff] }
 0x26f   :  { %v4048_v29 = vpack.c.bf16 %v3206_v23, %v3204_v22 }
 0x271   :  { %4013 = vmatpush1.bf16.msra.mxu1 %v4012_v32  ;;  %v3208_v32 = vld [vmem:[#allocation9 + $0x520] sm:$0xff] }
 0x272   :  { %4015 = vmatprep.subr.bf16.mxu1 %v4014_v35  ;;  %v3213_v35 = vld [vmem:[#allocation9 + $0x548] sm:$0xff]  ;;  %v4052_v37 = vpack.c.bf16 %v3210_v34, %v3208_v32 }
 0x273   :  { %v4054_v17 = vpack.c.bf16 %v3215_v9, %v3213_v35 }
 0x274   :  { %3390 = vmatmul.mubr.f32.vlgmr.msra.gmra.mrb[4].mxu1 %v3034_v40  ;;  %v3217_v40 = vld [vmem:[#allocation9 + $0x568] sm:$0xff] }
 0x275   :  { %3395 = vmatprep.mubr.f32.mxu1 %v3041_v44  ;;  %4017 = vmatpush1.bf16.msra.mxu1 %v4016_v36  ;;  %v3214_v36 = vld [vmem:[#allocation9 + $0x550] sm:$0xff]  ;;  %v3216_v44 = vld [vmem:[#allocation9 + $0x560] sm:$0xff] }
 0x276   :  { %4019 = vmatprep.subr.bf16.mxu1 %v4018_v41  ;;  %v3219_v41 = vld [vmem:[#allocation9 + $0x578] sm:$0xff]  ;;  %v4056_v42 = vpack.c.bf16 %v3214_v36, %v3212_v38 }
 0x277   :  { %v4058_v43 = vpack.c.bf16 %v3219_v41, %v3217_v40 }
 0x278   :  { %3396 = vmatmul.mubr.f32.gmra.mrb[6].mxu1 %v3040_v48  ;;  %v4060_v48 = vpack.c.bf16 %v3218_v45, %v3216_v44 }
 0x279   :  { %4021 = vmatpush1.bf16.msra.mxu1 %v4020_v47  ;;  %v3223_v47 = vld [vmem:[#allocation9 + $0x598] sm:$0xff] }
 0x27a   :  { %4023 = vmatprep.subr.bf16.mxu1 %v4022_v49  ;;  %v4062_v49 = vpack.c.bf16 %v3223_v47, %v3221_v46 }
 0x27d   :  { %4025 = vmatpush1.bf16.msra.mxu1 %v4024_v50  ;;  %v4064_v50 = vpack.c.bf16 %v3222_v52, %v3220_v51 }
 0x27e   :  { %4027 = vmatprep.subr.bf16.mxu1 %v4026_v54  ;;  %v4066_v54 = vpack.c.bf16 %v3227_v53, %v3225_v15 }
 0x281   :  { %4029 = vmatpush1.bf16.msra.mxu1 %v4028_v57  ;;  %v4068_v57 = vpack.c.bf16 %v3226_v24, %v3224_v31 }
 0x282   :  { %4031 = vmatprep.subr.bf16.mxu1 %v4030_v58  ;;  %v4070_v58 = vpack.c.bf16 %v3231_v56, %v3229_v55 }
 0x285   :  { %4033 = vmatpush1.bf16.msra.mxu1 %v4032_v62  ;;  %v3235_v62 = vld [vmem:[#allocation9 + $0x5f8] sm:$0xff] }
 0x286   :  { %4035 = vmatprep.subr.bf16.mxu1 %v4034_v63  ;;  %v4074_v63 = vpack.c.bf16 %v3235_v62, %v3233_v61 }
 0x289   :  { %4037 = vmatpush1.bf16.msra.mxu1 %v4036_v6  ;;  %v3020_v6 = vsub.s32 4, %v4998_v2 }
 0x28a   :  { %4039 = vmatprep.subr.bf16.mxu1 %v4038_v7  ;;  %v3025_v7 = vrot.slane %v5001_v5, %v3024_v4 }
 0x28b   :  { %v3021_v8 = vrot.slane %v5001_v5, %v3020_v6 }
 0x28d   :  { %4041 = vmatpush1.bf16.msra.mxu1 %v4040_v13 }
 0x28e   :  { %4043 = vmatprep.subr.bf16.mxu1 %v4042_v14 }
 0x291   :  { %4045 = vmatpush1.bf16.msra.mxu1 %v4044_v20  ;;  %v3241_v20 = vrot.slane %v3236_v19, %v3004_v33 }
 0x292   :  { %4047 = vmatprep.subr.bf16.mxu1 %v4046_v21  ;;  %v3245_v21 = vrot.slane %v3236_v19, %v3008_v28 }
 0x295   :  { %4049 = vmatpush1.bf16.msra.mxu1 %v4048_v29 }
 0x296   :  { %4051 = vmatprep.subr.bf16.mxu1 %v4050_v30 }
 0x299   :  { %4053 = vmatpush1.bf16.msra.mxu1 %v4052_v37 }
 0x29a   :  { %4055 = vmatprep.subr.bf16.mxu1 %v4054_v17 }
 0x29d   :  { %4057 = vmatpush1.bf16.msra.mxu1 %v4056_v42 }
 0x29e   :  { %4059 = vmatprep.subr.bf16.mxu1 %v4058_v43 }
 0x2a1   :  { %4061 = vmatpush1.bf16.msra.mxu1 %v4060_v48 }
 0x2a2   :  { %4063 = vmatprep.subr.bf16.mxu1 %v4062_v49 }
 0x2a5   :  { %4065 = vmatpush1.bf16.msra.mxu1 %v4064_v50 }
 0x2a6   :  { %4067 = vmatprep.subr.bf16.mxu1 %v4066_v54 }
 0x2a9   :  { %4069 = vmatpush1.bf16.msra.mxu1 %v4068_v57 }
 0x2aa   :  { %4071 = vmatprep.subr.bf16.mxu1 %v4070_v58 }
 0x2ad   :  { %4073 = vmatpush1.bf16.msra.mxu1 %v4072_v60 }
 0x2ae   :  { %4075 = vmatprep.subr.bf16.mxu1 %v4074_v63 }
 0x2b1   :  { %4077 = vmatpush1.bf16.msra.mxu1 %v4076_v3 }
 0x32f   :  { %v2920_v10 = vpop.f32.mrb[4].mxu0 }
 0x330   :  { %v2922_v11 = vpop.f32.mrb[5].mxu0  ;;  %v3036_v14 = vadd.f32 %v3021_v8, %v2920_v10 }
 0x331   :  { %v3037_v12 = vadd.f32 %v3025_v7, %v2922_v11  ;;  %v2924_v13 = vpop.f32.mrb[6].mxu0 }
 0x332   :  { %v2926_v39 = vpop.f32.mrb[7].mxu0  ;;  %v3042_v18 = vadd.f32 %v3021_v8, %v2924_v13 }
 0x333   :  { %v3043_v16 = vadd.f32 %v3025_v7, %v2926_v39  ;;  %3466 = vmatprep.mubr.f32.mxu1 %v3037_v12 }
 0x334   :  { %3467 = vmatmul.mubr.f32.vlgmr.msra.gmra.mrb[4].mxu1 %v3036_v14 }
 0x335   :  { %3472 = vmatprep.mubr.f32.mxu1 %v3043_v16 }
 0x338   :  { %3473 = vmatmul.mubr.f32.gmra.mrb[6].mxu1 %v3042_v18 }
 0x407   :  { %v3468_v5 = vpop.f32.mrb[4].mxu1 }
 0x408   :  { %v4078_v22 = vadd.f32 %v3468_v5, %v3241_v20  ;;  %v3470_v23 = vpop.f32.mrb[5].mxu1 }
 0x409   :  { %v4079_v26 = vadd.f32 %v3470_v23, %v3245_v21 }
 0x40a   :  { %3479 = vst [vmem:[#allocation12] sm:$0xff] %v4078_v22 }
 0x40b   :  { %3480 = vst [vmem:[#allocation12 + $0x8] sm:$0xff] %v4079_v26  ;;  %v3474_v27 = vpop.f32.mrb[6].mxu1 }
 0x40c   :  { %v4080_v29 = vadd.f32 %v3474_v27, %v3241_v20  ;;  %v3476_v30 = vpop.f32.mrb[7].mxu1 }
 0x40d   :  { %v4081_v32 = vadd.f32 %v3476_v30, %v3245_v21 }
 0x40e   :  { %3481 = vst [vmem:[#allocation12 + $0x10] sm:$0xff] %v4080_v29 }
 0x40f   :  { %3482 = vst [vmem:[#allocation12 + $0x18] sm:$0xff] %v4081_v32 }
 0x410   :  { %4835 = shalt.err (!%p4832_p2)
}
 0x411   :  { %s4836_s9 = scalar_lea.hbm %s5056_s5, 512 }
 0x412   :  { %p4837_p3 = scmp.ne.s32.totalorder %s5056_s5, %s4836_s9  ;;  %p4840_p4 = scmp.lt.u32.totalorder %s4836_s9, %s5056_s5 }
 0x414   :  { %p4842_p5 = pnand %p4840_p4, %p4837_p3 }
 0x416   :  { %4845 = shalt.err (!%p4842_p5)
}
 0x417   :  { %3494 = dma.vmem_to_hbm [thread:$0]  %s3489_s30, 512, %s5056_s5, [#allocation5], %s4858_s1, %s4858_s1, %s4859_s17  }
 0x418   :  { %4852 = dma.done.wait [#allocation5], 512  }
 0x419   :  { %4853 = vsyncadd [#allocation5], 4294966784 }
 0x41a   :  { %3498 = vsyncpa [#allocation4], 1 }
 0x41b   :  { %3499 = vsyncpa [#allocation7], 1 }
 0x41c   :  { %3500 = vsyncpa [#allocation10], 1 }
 0x41d   :  { %3501 = vsyncpa [#allocation5], 1 }

</bundles_post_ra>
